<compile_context>
chip_gen: v6e
topology: v6e:2x2x1
jax: 0.10.0
libtpu: 0.0.40
codegen_flags: <defaults>
</compile_context>

<pallas_src>
import functools

import numpy as np
import jax
import jax.numpy as jnp
from jax import lax
from jax.experimental import pallas as pl
from jax.experimental.pallas import tpu as pltpu


# ----------------------------------------------------------------------------
# Parameter preparation: exact conv -> dense (block-Toeplitz) matrices
# ----------------------------------------------------------------------------
def conv_dense_matrix(w_oihw, H, W, stride, pad, in_layout="NHWC"):
    """Exact dense matrix T of shape (H*W*IC, OH*OW*OC) such that
       flatten(conv2d(x)) == flatten(x) @ T,
    with the input flattened in `in_layout` order ("NHWC" or "NCHW") and the
    output flattened in NHWC order ((oh, ow, oc), oc fastest)."""
    OC, IC, KH, KW = w_oihw.shape
    OH = (H + 2 * pad - KH) // stride + 1
    OW = (W + 2 * pad - KW) // stride + 1

    oh, ow, di, dj, ic, oc = np.meshgrid(
        np.arange(OH), np.arange(OW), np.arange(KH), np.arange(KW),
        np.arange(IC), np.arange(OC), indexing="ij")
    ih = oh * stride + di - pad
    iw = ow * stride + dj - pad
    valid = (ih >= 0) & (ih < H) & (iw >= 0) & (iw < W)
    oh, ow, di, dj, ic, oc, ih, iw = (
        a[valid] for a in (oh, ow, di, dj, ic, oc, ih, iw))

    if in_layout == "NHWC":
        rows = (ih * W + iw) * IC + ic
    else:  # "NCHW" flattening of the raw input image
        rows = (ic * H + ih) * W + iw
    cols = (oh * OW + ow) * OC + oc
    src = ((oc * IC + ic) * KH + di) * KW + dj      # flat index into OIHW weight

    T = jnp.zeros((H * W * IC, OH * OW * OC), jnp.float32)
    T = T.at[rows, cols].add(w_oihw.reshape(-1)[src])
    return T, OH, OW


def prepare_dense_params(params, opt):
    """One-time weight preprocessing.

    Each Conv2d becomes an exact block-Toeplitz matrix, augmented so that
      * an extra "bias row" (fed by a constant-1 activation column) replaces
        the separate bias add,
      * an extra output column regenerates the constant-1 for the next layer
        (LeakyReLU(1) == 1, so it passes through untouched),
      * the two heads are packed side-by-side into one lane-dense
        (K+1, 128) matrix (src cols, cls cols, zero padding).
    All matrices are cast to bfloat16 (MXU feeds); accumulation is f32.
    Returns (mats, meta) with mats = [W1_aug, ..., Wn_aug, W_head].
    """
    LANE = 128
    mats = []
    curH = curW = opt.image_size
    in_layout = "NCHW"          # first layer consumes the NCHW-flat input image
    for (w, b) in params["main"]:
        T, OH, OW = conv_dense_matrix(w, curH, curW, stride=2, pad=1,
                                      in_layout=in_layout)
        K, N = T.shape
        brow = jnp.tile(b, OH * OW)                 # bias in (oh,ow,oc) order
        W_aug = jnp.zeros((K + 1, N + 1), jnp.float32)
        W_aug = W_aug.at[:K, :N].set(T)
        W_aug = W_aug.at[K, :N].set(brow)           # bias row (hit by the 1-col)
        W_aug = W_aug.at[K, N].set(1.0)             # regenerate the constant-1 col
        mats.append(W_aug.astype(jnp.bfloat16))
        curH, curW, in_layout = OH, OW, "NHWC"

    # Heads: one packed lane-dense matrix -> one matmul, one unmasked store.
    w_src, b_src = params["src"]
    T_src, sh, sw = conv_dense_matrix(w_src, curH, curW, stride=1, pad=1,
                                      in_layout="NHWC")
    w_cls, b_cls = params["cls"]
    T_cls, _, _ = conv_dense_matrix(w_cls, curH, curW, stride=1, pad=0,
                                    in_layout="NHWC")
    K = T_src.shape[0]                              # == curH*curW*conv_dim
    n_src, n_cls = T_src.shape[1], T_cls.shape[1]
    n_head = n_src + n_cls + ((-(n_src + n_cls)) % LANE)
    Wh = jnp.zeros((K + 1, n_head), jnp.float32)
    Wh = Wh.at[:K, :n_src].set(T_src)
    Wh = Wh.at[:K, n_src:n_src + n_cls].set(T_cls)
    Wh = Wh.at[K, :n_src].set(jnp.tile(b_src, sh * sw))   # folded head biases
    Wh = Wh.at[K, n_src:n_src + n_cls].set(b_cls)
    mats.append(Wh.astype(jnp.bfloat16))

    meta = dict(src_hw=(sh, sw), n_src=n_src, n_cls=n_cls,
                n_main=len(params["main"]))
    return mats, meta


# ----------------------------------------------------------------------------
# Fused Pallas kernel: entire forward pass in one call
# ----------------------------------------------------------------------------
def _fused_disc_kernel(n_main, x_ref, *refs):
    # refs = (W1_aug, ..., Wn_aug, W_head, out); biases are folded into the
    # weights via the trailing constant-1 activation column.
    o_ref = refs[-1]
    h = x_ref[...]                                   # bf16 (M, K0+1)
    for i in range(n_main):
        z = jnp.dot(h, refs[i][...], preferred_element_type=jnp.float32)
        # LeakyReLU(0.01): vmul+vmax; also preserves the constant-1 column.
        h = jnp.maximum(z, 0.01 * z).astype(jnp.bfloat16)
    o = jnp.dot(h, refs[n_main][...], preferred_element_type=jnp.float32)
    o_ref[...] = o.astype(o_ref.dtype)


@functools.partial(jax.jit, static_argnums=0)
def _fused_forward_pallas(n_main, x_flat, *mats):
    B, K0 = x_flat.shape
    M = max(8, -(-B // 8) * 8)                       # full-sublane batch rows
    # Pad batch to M rows, append the constant-1 bias column, cast to bf16.
    x = jnp.zeros((M, K0 + 1), jnp.bfloat16)
    x = x.at[:B, :K0].set(x_flat.astype(jnp.bfloat16))
    x = x.at[:B, K0].set(1.0)

    n_out = mats[-1].shape[1]                        # packed head width (128)
    kernel = functools.partial(_fused_disc_kernel, n_main)

    def full2d(a):
        return pl.BlockSpec(a.shape, lambda: (0, 0))

    # VMEM budget from the actual buffers (x + weights + out), with headroom
    # for double-buffering and intermediates; capped at v7x's 64 MiB physical.
    buf_bytes = (x.size * x.dtype.itemsize
                 + sum(m.size * m.dtype.itemsize for m in mats)
                 + M * n_out * 4)
    vmem_limit = int(min(64 << 20, max(16 << 20, 4 * buf_bytes)))

    out = pl.pallas_call(
        kernel,
        out_shape=jax.ShapeDtypeStruct((M, n_out), jnp.float32),
        in_specs=[full2d(x)] + [full2d(m) for m in mats],
        out_specs=pl.BlockSpec((M, n_out), lambda: (0, 0)),
        compiler_params=pltpu.CompilerParams(vmem_limit_bytes=vmem_limit),
    )(x, *mats)
    return out[:B]


def discriminator_forward(mats, meta, images_nchw):
    B = images_nchw.shape[0]
    x = images_nchw.reshape(B, -1)                   # NCHW-flat; the NCHW->NHWC
    out = _fused_forward_pallas(meta["n_main"], x, *mats)  # transpose is in W1
    sh, sw = meta["src_hw"]
    n_src, n_cls = meta["n_src"], meta["n_cls"]
    out_src = out[:, :n_src].reshape(B, 1, sh, sw)   # (oh,ow) cols, OC=1 -> NCHW
    out_cls = out[:, n_src:n_src + n_cls]            # (B, num_attr)
    return out_src, out_cls


# ----------------------------------------------------------------------------
# Discriminator config + parameter init (matches the PyTorch module)
# ----------------------------------------------------------------------------
class Opt:
    D_filter_size = 8
    num_repeat = 2
    image_size = 16
    num_attr = 5


def init_params(key, opt):
    params = {"main": []}
    conv_dim = opt.D_filter_size

    def conv_init(key, oc, ic, k):
        kw, kb = jax.random.split(key)
        fan_in = ic * k * k
        scale = 1.0 / jnp.sqrt(fan_in)
        w = jax.random.uniform(kw, (oc, ic, k, k), jnp.float32, -scale, scale)
        b = jax.random.uniform(kb, (oc,), jnp.float32, -scale, scale)
        return w, b

    keys = jax.random.split(key, opt.num_repeat + 2)
    params["main"].append(conv_init(keys[0], conv_dim, 3, 4))
    for i in range(1, opt.num_repeat):
        params["main"].append(conv_init(keys[i], conv_dim * 2, conv_dim, 4))
        conv_dim *= 2
    params["src"] = conv_init(keys[opt.num_repeat], 1, conv_dim, 3)
    ksize = int(opt.image_size // (2 ** opt.num_repeat))
    params["cls"] = conv_init(keys[opt.num_repeat + 1], opt.num_attr, conv_dim, ksize)
    return params


# ----------------------------------------------------------------------------
# References for sanity checking
# ----------------------------------------------------------------------------
def _conv_ref(x_nhwc, w_oihw, b, stride, pad):
    w_hwio = jnp.transpose(w_oihw, (2, 3, 1, 0))
    y = lax.conv_general_dilated(
        x_nhwc, w_hwio, (stride, stride), [(pad, pad), (pad, pad)],
        dimension_numbers=("NHWC", "HWIO", "NHWC"))
    return y + b.reshape(1, 1, 1, -1)


def discriminator_ref(params, images_nchw):
    """Full-f32 reference (the original module semantics)."""
    h = jnp.transpose(images_nchw, (0, 2, 3, 1))
    for (w, b) in params["main"]:
        h = _conv_ref(h, w, b, 2, 1)
        h = jnp.where(h >= 0, h, 0.01 * h)
    ws, bs = params["src"]
    out_src = jnp.transpose(_conv_ref(h, ws, bs, 1, 1), (0, 3, 1, 2))
    wc, bc = params["cls"]
    out_cls = _conv_ref(h, wc, bc, 1, 0).reshape(images_nchw.shape[0], -1)
    return out_src, out_cls


def _conv_q(x_nhwc_bf16, w_oihw, b, stride, pad):
    """bf16 operands, f32 accumulation (mirrors the kernel's MXU numerics)."""
    w_hwio = jnp.transpose(w_oihw, (2, 3, 1, 0)).astype(jnp.bfloat16)
    y = lax.conv_general_dilated(
        x_nhwc_bf16, w_hwio, (stride, stride), [(pad, pad), (pad, pad)],
        dimension_numbers=("NHWC", "HWIO", "NHWC"),
        preferred_element_type=jnp.float32)
    return y + b.astype(jnp.bfloat16).astype(jnp.float32).reshape(1, 1, 1, -1)


def discriminator_ref_quant(params, images_nchw):
    """Reference with the same bf16-weight / bf16-activation quantization as
    the Pallas kernel; used for a tight structural correctness check."""
    h = jnp.transpose(images_nchw, (0, 2, 3, 1)).astype(jnp.bfloat16)
    for (w, b) in params["main"]:
        z = _conv_q(h, w, b, 2, 1)
        h = jnp.maximum(z, 0.01 * z).astype(jnp.bfloat16)
    ws, bs = params["src"]
    out_src = jnp.transpose(_conv_q(h, ws, bs, 1, 1), (0, 3, 1, 2))
    wc, bc = params["cls"]
    out_cls = _conv_q(h, wc, bc, 1, 0).reshape(images_nchw.shape[0], -1)
    return out_src, out_cls


if __name__ == "__main__":
    opt = Opt()
    key = jax.random.PRNGKey(0)
    k_params, k_img = jax.random.split(key)
    params = init_params(k_params, opt)
    mats, meta = prepare_dense_params(params, opt)   # one-time preprocessing

    B = 2
    images = jax.random.normal(
        k_img, (B, 3, opt.image_size, opt.image_size), jnp.float32)  # NCHW

    out_src, out_cls = discriminator_forward(mats, meta, images)
    out_src, out_cls = jax.block_until_ready((out_src, out_cls))

    assert out_src.shape == (B, 1, opt.image_size // 4, opt.image_size // 4)
    assert out_cls.shape == (B, opt.num_attr)

    # Tight check vs a reference with identical bf16/f32 numerics: validates
    # the Toeplitz construction, bias folding and head packing exactly.
    q_src, q_cls = discriminator_ref_quant(params, images)
    assert jnp.allclose(out_src, q_src, atol=1e-3, rtol=1e-3)
    assert jnp.allclose(out_cls, q_cls, atol=1e-3, rtol=1e-3)

    # Loose check vs the full-f32 module reference (bf16 weight cast shifts
    # results at the ~1e-3..1e-2 level, as anticipated in the perf review).
    f_src, f_cls = discriminator_ref(params, images)
    assert jnp.allclose(out_src, f_src, atol=5e-2, rtol=5e-2)
    assert jnp.allclose(out_cls, f_cls, atol=5e-2, rtol=5e-2)

    print("KERNEL_OK")
</pallas_src>

<mosaic_0001>
module attributes {stable_mosaic.version = 11 : i64} {
  func.func @_fused_disc_kernel(%arg0: memref<8x769xbf16, #tpu.memory_space<vmem>>, %arg1: memref<769x513xbf16, #tpu.memory_space<vmem>>, %arg2: memref<513x257xbf16, #tpu.memory_space<vmem>>, %arg3: memref<257x128xbf16, #tpu.memory_space<vmem>>, %arg4: memref<8x128xf32, #tpu.memory_space<vmem>>) attributes {dimension_semantics = [], scalar_prefetch = 0 : i64, scratch_operands = 0 : i64, tpu.core_type = #tpu.core_type<tc>} {
    %c0 = arith.constant 0 : index
    %c0_0 = arith.constant 0 : index
    %0 = vector.load %arg0[%c0, %c0_0] : memref<8x769xbf16, #tpu.memory_space<vmem>>, vector<8x769xbf16>
    %c0_1 = arith.constant 0 : index
    %c0_2 = arith.constant 0 : index
    %1 = vector.load %arg1[%c0_1, %c0_2] : memref<769x513xbf16, #tpu.memory_space<vmem>>, vector<769x513xbf16>
    %cst = arith.constant dense<0.000000e+00> : vector<8x513xf32>
    %2 = tpu.matmul %0, %1, %cst {dimension_numbers = #tpu.dot_dimension_numbers<[1], [0], [0], [1], [0, 0, 1, 1], [], []>} : vector<8x769xbf16>, vector<769x513xbf16>, vector<8x513xf32> -> vector<8x513xf32>
    %cst_3 = arith.constant 0.00999999977 : f32
    %3 = vector.broadcast %cst_3 : f32 to vector<8x513xf32>
    %4 = arith.mulf %3, %2 : vector<8x513xf32>
    %5 = arith.maximumf %2, %4 : vector<8x513xf32>
    %6 = arith.truncf %5 : vector<8x513xf32> to vector<8x513xbf16>
    %c0_4 = arith.constant 0 : index
    %c0_5 = arith.constant 0 : index
    %7 = vector.load %arg2[%c0_4, %c0_5] : memref<513x257xbf16, #tpu.memory_space<vmem>>, vector<513x257xbf16>
    %cst_6 = arith.constant dense<0.000000e+00> : vector<8x257xf32>
    %8 = tpu.matmul %6, %7, %cst_6 {dimension_numbers = #tpu.dot_dimension_numbers<[1], [0], [0], [1], [0, 0, 1, 1], [], []>} : vector<8x513xbf16>, vector<513x257xbf16>, vector<8x257xf32> -> vector<8x257xf32>
    %cst_7 = arith.constant 0.00999999977 : f32
    %9 = vector.broadcast %cst_7 : f32 to vector<8x257xf32>
    %10 = arith.mulf %9, %8 : vector<8x257xf32>
    %11 = arith.maximumf %8, %10 : vector<8x257xf32>
    %12 = arith.truncf %11 : vector<8x257xf32> to vector<8x257xbf16>
    %c0_8 = arith.constant 0 : index
    %c0_9 = arith.constant 0 : index
    %13 = vector.load %arg3[%c0_8, %c0_9] : memref<257x128xbf16, #tpu.memory_space<vmem>>, vector<257x128xbf16>
    %cst_10 = arith.constant dense<0.000000e+00> : vector<8x128xf32>
    %14 = tpu.matmul %12, %13, %cst_10 {dimension_numbers = #tpu.dot_dimension_numbers<[1], [0], [0], [1], [0, 0, 1, 1], [], []>} : vector<8x257xbf16>, vector<257x128xbf16>, vector<8x128xf32> -> vector<8x128xf32>
    %c0_11 = arith.constant 0 : index
    %c0_12 = arith.constant 0 : index
    %15 = vector.load %arg4[%c0_11, %c0_12] : memref<8x128xf32, #tpu.memory_space<vmem>>, vector<8x128xf32>
    tpu.vector_store %arg4[%c0_11, %c0_12], %14 {strides = array<i32>} : memref<8x128xf32, #tpu.memory_space<vmem>>, vector<8x128xf32>,
    return
  }
}

</mosaic_0001>

<bundles_post_ra>
// kernel: _fused_forward_pallas.1
= control target key start
LH: loop header
LB: loop body
LE: loop exit
PB: predicated region body
PF: predicated region fallthrough
CT: control target
= control target key end

     0   :  { %vm1602_vm0 = vcmask 1040384   ;;  %vm1598_vm1 = vcmask 7168   ;;  %vm4291_vm2 = vmmov 0   ;;  %s5491_s1 = inlined_call_operand.vmem [shape: bf16[769,513], index: 1, kind: input, shape index: {}]   ;;  %s5492_s0 = inlined_call_operand.vmem [shape: bf16[8,769], index: 0, kind: input, shape index: {}]   ;;  %s5493_s2 = inlined_call_operand.vmem [shape: bf16[513,257], index: 2, kind: input, shape index: {}]   ;;  %s5494_s3 = inlined_call_operand.vmem [shape: bf16[257,128], index: 3, kind: input, shape index: {}]   ;;  %s5495_s4 = inlined_call_operand.vmem [shape: f32[8,128], index: 4, kind: output, shape index: {}]  }
   0x1   :  { %v3793_v0 = vld [vmem:[%s5491_s1 + $0x11c] ss:$20 sps:$4 sm:$0xff]   ;;  %v3797_v2 = vld [vmem:[%s5491_s1 + $0x118] ss:$20 sps:$4 sm:$0xff]   ;;  %v3799_v4 = vld [vmem:[%s5491_s1 + $0xf4] ss:$20 sps:$4 sm:$0xff]  }
   0x2   :  { %v3795_v1 = vld [vmem:[%s5491_s1 + $0x39c] ss:$20 sps:$4 sm:$0xff]   ;;  %1620 = vmatprep.subr.bf16.mxu0 %v3793_v0  ;;  %v3798_v3 = vld [vmem:[%s5491_s1 + $0x398] ss:$20 sps:$4 sm:$0xff]   ;;  %v3801_v5 = vld [vmem:[%s5491_s1 + $0x374] ss:$20 sps:$4 sm:$0xff]  }
   0x3   :  { %1661 = vmatprep.subr.bf16.mxu1 %v3795_v1  ;;  %1621 = vmatpush1.bf16.msra.mxu0 %v3797_v2  ;;  %v3803_v6 = vld [vmem:[%s5491_s1 + $0xf0] ss:$20 sps:$4 sm:$0xff]   ;;  %v3805_v8 = vld [vmem:[%s5491_s1 + $0xcc] ss:$20 sps:$4 sm:$0xff]   ;;  %v3809_v10 = vld [vmem:[%s5491_s1 + $0xc8] ss:$20 sps:$4 sm:$0xff]  }
   0x4   :  { %1662 = vmatpush1.bf16.msra.mxu1 %v3798_v3  ;;  %1622 = vmatprep.subr.bf16.mxu0 %v3799_v4  ;;  %v3804_v7 = vld [vmem:[%s5491_s1 + $0x370] ss:$20 sps:$4 sm:$0xff]   ;;  %v3807_v9 = vld [vmem:[%s5491_s1 + $0x34c] ss:$20 sps:$4 sm:$0xff]   ;;  %v3810_v11 = vld [vmem:[%s5491_s1 + $0x348] ss:$20 sps:$4 sm:$0xff]  }
   0x5   :  { %1663 = vmatprep.subr.bf16.mxu1 %v3801_v5  ;;  %v3811_v12 = vld [vmem:[%s5491_s1 + $0xa4] ss:$20 sps:$4 sm:$0xff]   ;;  %v3815_v14 = vld [vmem:[%s5491_s1 + $0xa0] ss:$20 sps:$4 sm:$0xff]   ;;  %v3817_v16 = vld [vmem:[%s5491_s1 + $0x7c] ss:$20 sps:$4 sm:$0xff]  }
   0x6   :  { %v3813_v13 = vld [vmem:[%s5491_s1 + $0x324] ss:$20 sps:$4 sm:$0xff]   ;;  %v3816_v15 = vld [vmem:[%s5491_s1 + $0x320] ss:$20 sps:$4 sm:$0xff]   ;;  %v3819_v17 = vld [vmem:[%s5491_s1 + $0x2fc] ss:$20 sps:$4 sm:$0xff]  }
   0x7   :  { %1623 = vmatpush1.bf16.msra.mxu0 %v3803_v6  ;;  %v3821_v18 = vld [vmem:[%s5491_s1 + $0x78] ss:$20 sps:$4 sm:$0xff]   ;;  %v3823_v20 = vld [vmem:[%s5491_s1 + $0x54] ss:$20 sps:$4 sm:$0xff]   ;;  %v3827_v22 = vld [vmem:[%s5491_s1 + $0x50] ss:$20 sps:$4 sm:$0xff]  }
   0x8   :  { %1664 = vmatpush1.bf16.msra.mxu1 %v3804_v7  ;;  %1624 = vmatprep.subr.bf16.mxu0 %v3805_v8  ;;  %v3822_v19 = vld [vmem:[%s5491_s1 + $0x2f8] ss:$20 sps:$4 sm:$0xff]   ;;  %v3825_v21 = vld [vmem:[%s5491_s1 + $0x2d4] ss:$20 sps:$4 sm:$0xff]   ;;  %v3828_v23 = vld [vmem:[%s5491_s1 + $0x2d0] ss:$20 sps:$4 sm:$0xff]  }
   0x9   :  { %1665 = vmatprep.subr.bf16.mxu1 %v3807_v9  ;;  %v3829_v24 = vld [vmem:[%s5491_s1 + $0x2c] ss:$20 sps:$4 sm:$0xff]   ;;  %v3833_v26 = vld [vmem:[%s5491_s1 + $0x28] ss:$20 sps:$4 sm:$0xff]   ;;  %v3835_v28 = vld [vmem:[%s5491_s1 + $0x4] ss:$20 sps:$4 sm:$0xff]  }
   0xa   :  { %v3831_v25 = vld [vmem:[%s5491_s1 + $0x2ac] ss:$20 sps:$4 sm:$0xff]   ;;  %v3834_v27 = vld [vmem:[%s5491_s1 + $0x2a8] ss:$20 sps:$4 sm:$0xff]   ;;  %v3837_v29 = vld [vmem:[%s5491_s1 + $0x284] ss:$20 sps:$4 sm:$0xff]  }
   0xb   :  { %1625 = vmatpush1.bf16.msra.mxu0 %v3809_v10  ;;  %v3839_v30 = vld [vmem:[%s5491_s1] ss:$20 sps:$4 sm:$0xff]   ;;  %v3841_v32 = vld [vmem:[%s5491_s1 + $0x25c] ss:$20 sps:$4 sm:$0xff]   ;;  %v3845_v34 = vld [vmem:[%s5491_s1 + $0x258] ss:$20 sps:$4 sm:$0xff]  }
   0xc   :  { %1666 = vmatpush1.bf16.msra.mxu1 %v3810_v11  ;;  %1626 = vmatprep.subr.bf16.mxu0 %v3811_v12  ;;  %v3840_v31 = vld [vmem:[%s5491_s1 + $0x280] ss:$20 sps:$4 sm:$0xff]   ;;  %v3843_v33 = vld [vmem:[%s5491_s1 + $0x4dc] ss:$20 sps:$4 sm:$0xff]   ;;  %v3846_v35 = vld [vmem:[%s5491_s1 + $0x4d8] ss:$20 sps:$4 sm:$0xff]  }
   0xd   :  { %1667 = vmatprep.subr.bf16.mxu1 %v3813_v13  ;;  %v3847_v36 = vld [vmem:[%s5491_s1 + $0x234] ss:$20 sps:$4 sm:$0xff]   ;;  %v3851_v38 = vld [vmem:[%s5491_s1 + $0x230] ss:$20 sps:$4 sm:$0xff]   ;;  %v3853_v40 = vld [vmem:[%s5491_s1 + $0x20c] ss:$20 sps:$4 sm:$0xff]  }
   0xe   :  { %v3849_v37 = vld [vmem:[%s5491_s1 + $0x4b4] ss:$20 sps:$4 sm:$0xff]   ;;  %v3852_v39 = vld [vmem:[%s5491_s1 + $0x4b0] ss:$20 sps:$4 sm:$0xff]   ;;  %v3855_v41 = vld [vmem:[%s5491_s1 + $0x48c] ss:$20 sps:$4 sm:$0xff]  }
   0xf   :  { %1627 = vmatpush1.bf16.msra.mxu0 %v3815_v14  ;;  %v3857_v42 = vld [vmem:[%s5491_s1 + $0x208] ss:$20 sps:$4 sm:$0xff]   ;;  %v3859_v44 = vld [vmem:[%s5491_s1 + $0x1e4] ss:$20 sps:$4 sm:$0xff]   ;;  %v3863_v49 = vld [vmem:[%s5491_s1 + $0x1e0] ss:$20 sps:$4 sm:$0xff]  }
  0x10   :  { %1668 = vmatpush1.bf16.msra.mxu1 %v3816_v15  ;;  %1628 = vmatprep.subr.bf16.mxu0 %v3817_v16  ;;  %v3858_v43 = vld [vmem:[%s5491_s1 + $0x488] ss:$20 sps:$4 sm:$0xff]   ;;  %v3861_v45 = vld [vmem:[%s5491_s1 + $0x464] ss:$20 sps:$4 sm:$0xff]   ;;  %v3864_v50 = vld [vmem:[%s5491_s1 + $0x460] ss:$20 sps:$4 sm:$0xff]  }
  0x11   :  { %1669 = vmatprep.subr.bf16.mxu1 %v3819_v17  ;;  %v18_v46 = vld [vmem:[%s5492_s0] sm:$0xff]  ;;  %v19_v48 = vld [vmem:[%s5492_s0 + $0x8] sm:$0xff]  ;;  %v3865_v52 = vld [vmem:[%s5491_s1 + $0x1bc] ss:$20 sps:$4 sm:$0xff]  }
  0x12   :  { %v4458_v47 = vcombine.high %v18_v46, %v18_v46  ;;  %v4469_v51 = vcombine.high %v19_v48, %v19_v48  ;;  %v3867_v53 = vld [vmem:[%s5491_s1 + $0x43c] ss:$20 sps:$4 sm:$0xff]   ;;  %v3869_v54 = vld [vmem:[%s5491_s1 + $0x1b8] ss:$20 sps:$4 sm:$0xff]   ;;  %v3871_v56 = vld [vmem:[%s5491_s1 + $0x194] ss:$20 sps:$4 sm:$0xff]   ;;  %v4527_v6 = vcombine.low %v18_v46, %v18_v46  ;;  %v4529_v7 = vcombine.low %v19_v48, %v19_v48 }
  0x13   :  { %1629 = vmatpush1.bf16.msra.mxu0 %v3821_v18  ;;  %v3870_v55 = vld [vmem:[%s5491_s1 + $0x438] ss:$20 sps:$4 sm:$0xff]   ;;  %v3873_v57 = vld [vmem:[%s5491_s1 + $0x414] ss:$20 sps:$4 sm:$0xff]   ;;  %v3875_v58 = vld [vmem:[%s5491_s1 + $0x190] ss:$20 sps:$4 sm:$0xff]  }
  0x14   :  { %1670 = vmatpush1.bf16.msra.mxu1 %v3822_v19  ;;  %1630 = vmatprep.subr.bf16.mxu0 %v3823_v20  ;;  %v3876_v59 = vld [vmem:[%s5491_s1 + $0x410] ss:$20 sps:$4 sm:$0xff]   ;;  %v3877_v60 = vld [vmem:[%s5491_s1 + $0x16c] ss:$20 sps:$4 sm:$0xff]   ;;  %v3881_v62 = vld [vmem:[%s5491_s1 + $0x168] ss:$20 sps:$4 sm:$0xff]  }
  0x15   :  { %1671 = vmatprep.subr.bf16.mxu1 %v3825_v21  ;;  %1652 = vmatprep.mubr.bf16.mxu0 %v4458_v47  ;;  %v3879_v61 = vld [vmem:[%s5491_s1 + $0x3ec] ss:$20 sps:$4 sm:$0xff]   ;;  %v3882_v63 = vld [vmem:[%s5491_s1 + $0x3e8] ss:$20 sps:$4 sm:$0xff]   ;;  %v3883_v0 = vld [vmem:[%s5491_s1 + $0x144] ss:$20 sps:$4 sm:$0xff]  }
  0x16   :  { %1693 = vmatprep.mubr.bf16.mxu1 %v4469_v51  ;;  %v3885_v1 = vld [vmem:[%s5491_s1 + $0x3c4] ss:$20 sps:$4 sm:$0xff]   ;;  %v3887_v2 = vld [vmem:[%s5491_s1 + $0x140] ss:$20 sps:$4 sm:$0xff]   ;;  %v3895_v4 = vld [vmem:[%s5491_s1 + $0x61c] ss:$20 sps:$4 sm:$0xff]  }
  0x17   :  { %1631 = vmatpush1.bf16.msra.mxu0 %v3827_v22  ;;  %v3888_v3 = vld [vmem:[%s5491_s1 + $0x3c0] ss:$20 sps:$4 sm:$0xff]   ;;  %v3904_v5 = vld [vmem:[%s5491_s1 + $0x124] ss:$20 sps:$4 sm:$0xff]   ;;  %v3910_v11 = vld [vmem:[%s5491_s1 + $0xfc] ss:$20 sps:$4 sm:$0xff]  }
  0x18   :  { %1672 = vmatpush1.bf16.msra.mxu1 %v3828_v23  ;;  %1632 = vmatprep.subr.bf16.mxu0 %v3829_v24  ;;  %v3893_v8 = vld [vmem:[%s5491_s1 + $0x618] ss:$20 sps:$4 sm:$0xff]   ;;  %v3902_v9 = vld [vmem:[%s5491_s1 + $0x120] ss:$20 sps:$4 sm:$0xff]   ;;  %v3896_v12 = vld [vmem:[%s5491_s1 + $0x5f0] ss:$20 sps:$4 sm:$0xff]  }
  0x19   :  { %1673 = vmatprep.subr.bf16.mxu1 %v3831_v25  ;;  %v3898_v10 = vld [vmem:[%s5491_s1 + $0x5f4] ss:$20 sps:$4 sm:$0xff]   ;;  %v3908_v13 = vld [vmem:[%s5491_s1 + $0xf8] ss:$20 sps:$4 sm:$0xff]   ;;  %v3914_v17 = vld [vmem:[%s5491_s1 + $0xd0] ss:$20 sps:$4 sm:$0xff]  }
  0x1a   :  { %v3901_v14 = vld [vmem:[%s5491_s1 + $0x5cc] ss:$20 sps:$4 sm:$0xff]   ;;  %v3916_v15 = vld [vmem:[%s5491_s1 + $0xd4] ss:$20 sps:$4 sm:$0xff]   ;;  %v3907_v18 = vld [vmem:[%s5491_s1 + $0x5a4] ss:$20 sps:$4 sm:$0xff]  }
  0x1b   :  { %1633 = vmatpush1.bf16.msra.mxu0 %v3833_v26  ;;  %v3899_v16 = vld [vmem:[%s5491_s1 + $0x5c8] ss:$20 sps:$4 sm:$0xff]   ;;  %v3922_v19 = vld [vmem:[%s5491_s1 + $0xac] ss:$20 sps:$4 sm:$0xff]   ;;  %v3928_v23 = vld [vmem:[%s5491_s1 + $0x84] ss:$20 sps:$4 sm:$0xff]  }
  0x1c   :  { %1674 = vmatpush1.bf16.msra.mxu1 %v3834_v27  ;;  %1634 = vmatprep.subr.bf16.mxu0 %v3835_v28  ;;  %v3905_v20 = vld [vmem:[%s5491_s1 + $0x5a0] ss:$20 sps:$4 sm:$0xff]   ;;  %v3920_v21 = vld [vmem:[%s5491_s1 + $0xa8] ss:$20 sps:$4 sm:$0xff]   ;;  %v3911_v24 = vld [vmem:[%s5491_s1 + $0x578] ss:$20 sps:$4 sm:$0xff]  }
  0x1d   :  { %1675 = vmatprep.subr.bf16.mxu1 %v3837_v29  ;;  %v3913_v22 = vld [vmem:[%s5491_s1 + $0x57c] ss:$20 sps:$4 sm:$0xff]   ;;  %v3926_v25 = vld [vmem:[%s5491_s1 + $0x80] ss:$20 sps:$4 sm:$0xff]   ;;  %v3956_v48 = vld [vmem:[%s5491_s1 + $0x238] ss:$20 sps:$4 sm:$0xff]  }
  0x1e   :  { %v3919_v26 = vld [vmem:[%s5491_s1 + $0x554] ss:$20 sps:$4 sm:$0xff]   ;;  %v3934_v27 = vld [vmem:[%s5491_s1 + $0x5c] ss:$20 sps:$4 sm:$0xff]   ;;  %v3925_v29 = vld [vmem:[%s5491_s1 + $0x52c] ss:$20 sps:$4 sm:$0xff]  }
  0x1f   :  { %1635 = vmatpush1.bf16.msra.mxu0 %v3839_v30  ;;  %v3917_v28 = vld [vmem:[%s5491_s1 + $0x550] ss:$20 sps:$4 sm:$0xff]  }
  0x20   :  { %1676 = vmatpush1.bf16.msra.mxu1 %v3840_v31  ;;  %1636 = vmatprep.subr.bf16.mxu0 %v3841_v32  ;;  %v4603_v30 = vld [vmem:[%s5492_s0 + $0x10] sm:$0xff]  ;;  %v3932_v31 = vld [vmem:[%s5491_s1 + $0x58] ss:$20 sps:$4 sm:$0xff]  }
  0x21   :  { %1677 = vmatprep.subr.bf16.mxu1 %v3843_v33  ;;  %v4610_v32 = vcombine.high %v4603_v30, %v4603_v30  ;;  %v3940_v33 = vld [vmem:[%s5491_s1 + $0x34] ss:$20 sps:$4 sm:$0xff]   ;;  %v3941_v46 = vld [vmem:[%s5491_s1 + $0x730] ss:$20 sps:$4 sm:$0xff]  }
  0x23   :  { %1637 = vmatpush2.bf16.msra.mxu0 %v3845_v34  ;;  %v3923_v34 = vld [vmem:[%s5491_s1 + $0x528] ss:$20 sps:$4 sm:$0xff]  }
  0x24   :  { %1678 = vmatpush2.bf16.msra.mxu1 %v3846_v35  ;;  %1638 = vmatprep.subr.bf16.mxu0 %v3847_v36  ;;  %v3938_v35 = vld [vmem:[%s5491_s1 + $0x30] ss:$20 sps:$4 sm:$0xff]  }
  0x25   :  { %1679 = vmatprep.subr.bf16.mxu1 %v3849_v37  ;;  %v3931_v36 = vld [vmem:[%s5491_s1 + $0x504] ss:$20 sps:$4 sm:$0xff]   ;;  %v3946_v37 = vld [vmem:[%s5491_s1 + $0xc] ss:$20 sps:$4 sm:$0xff]  }
  0x27   :  { %1639 = vmatpush2.bf16.msra.mxu0 %v3851_v38  ;;  %v3929_v38 = vld [vmem:[%s5491_s1 + $0x500] ss:$20 sps:$4 sm:$0xff]  }
  0x28   :  { %1680 = vmatpush2.bf16.msra.mxu1 %v3852_v39  ;;  %1640 = vmatprep.subr.bf16.mxu0 %v3853_v40  ;;  %v3944_v39 = vld [vmem:[%s5491_s1 + $0x8] ss:$20 sps:$4 sm:$0xff]  }
  0x29   :  { %1681 = vmatprep.subr.bf16.mxu1 %v3855_v41  ;;  %v3937_v40 = vld [vmem:[%s5491_s1 + $0x75c] ss:$20 sps:$4 sm:$0xff]   ;;  %v3952_v41 = vld [vmem:[%s5491_s1 + $0x264] ss:$20 sps:$4 sm:$0xff]  }
  0x2b   :  { %1641 = vmatpush2.bf16.msra.mxu0 %v3857_v42  ;;  %v3935_v42 = vld [vmem:[%s5491_s1 + $0x758] ss:$20 sps:$4 sm:$0xff]  }
  0x2c   :  { %1682 = vmatpush2.bf16.msra.mxu1 %v3858_v43  ;;  %1642 = vmatprep.subr.bf16.mxu0 %v3859_v44  ;;  %v3950_v43 = vld [vmem:[%s5491_s1 + $0x260] ss:$20 sps:$4 sm:$0xff]  }
  0x2d   :  { %1683 = vmatprep.subr.bf16.mxu1 %v3861_v45  ;;  %v3943_v44 = vld [vmem:[%s5491_s1 + $0x734] ss:$20 sps:$4 sm:$0xff]   ;;  %v3958_v45 = vld [vmem:[%s5491_s1 + $0x23c] ss:$20 sps:$4 sm:$0xff]  }
  0x2f   :  { %1643 = vmatpush2.bf16.msra.mxu0 %v3863_v49  ;;  %v3949_v49 = vld [vmem:[%s5491_s1 + $0x70c] ss:$20 sps:$4 sm:$0xff]  }
  0x30   :  { %1684 = vmatpush2.bf16.msra.mxu1 %v3864_v50  ;;  %1644 = vmatprep.subr.bf16.mxu0 %v3865_v52  ;;  %v3964_v50 = vld [vmem:[%s5491_s1 + $0x214] ss:$20 sps:$4 sm:$0xff]  }
  0x31   :  { %1685 = vmatprep.subr.bf16.mxu1 %v3867_v53  ;;  %v3947_v52 = vld [vmem:[%s5491_s1 + $0x708] ss:$20 sps:$4 sm:$0xff]   ;;  %v3962_v53 = vld [vmem:[%s5491_s1 + $0x210] ss:$20 sps:$4 sm:$0xff]  }
  0x33   :  { %1645 = vmatpush2.bf16.msra.mxu0 %v3869_v54  ;;  %v3955_v54 = vld [vmem:[%s5491_s1 + $0x6e4] ss:$20 sps:$4 sm:$0xff]  }
  0x34   :  { %1686 = vmatpush2.bf16.msra.mxu1 %v3870_v55  ;;  %1646 = vmatprep.subr.bf16.mxu0 %v3871_v56  ;;  %v3970_v55 = vld [vmem:[%s5491_s1 + $0x1ec] ss:$20 sps:$4 sm:$0xff]  }
  0x35   :  { %1687 = vmatprep.subr.bf16.mxu1 %v3873_v57  ;;  %v3953_v56 = vld [vmem:[%s5491_s1 + $0x6e0] ss:$20 sps:$4 sm:$0xff]   ;;  %v3968_v57 = vld [vmem:[%s5491_s1 + $0x1e8] ss:$20 sps:$4 sm:$0xff]  }
  0x37   :  { %1647 = vmatpush2.bf16.msra.mxu0 %v3875_v58  ;;  %v3961_v58 = vld [vmem:[%s5491_s1 + $0x6bc] ss:$20 sps:$4 sm:$0xff]  }
  0x38   :  { %1688 = vmatpush2.bf16.msra.mxu1 %v3876_v59  ;;  %1648 = vmatprep.subr.bf16.mxu0 %v3877_v60  ;;  %v3976_v59 = vld [vmem:[%s5491_s1 + $0x1c4] ss:$20 sps:$4 sm:$0xff]  }
  0x39   :  { %1689 = vmatprep.subr.bf16.mxu1 %v3879_v61  ;;  %v3959_v60 = vld [vmem:[%s5491_s1 + $0x6b8] ss:$20 sps:$4 sm:$0xff]   ;;  %v3974_v61 = vld [vmem:[%s5491_s1 + $0x1c0] ss:$20 sps:$4 sm:$0xff]  }
  0x3b   :  { %1649 = vmatpush2.bf16.msra.mxu0 %v3881_v62  ;;  %v3967_v62 = vld [vmem:[%s5491_s1 + $0x694] ss:$20 sps:$4 sm:$0xff]  }
  0x3c   :  { %1690 = vmatpush2.bf16.msra.mxu1 %v3882_v63  ;;  %1650 = vmatprep.subr.bf16.mxu0 %v3883_v0  ;;  %v3982_v63 = vld [vmem:[%s5491_s1 + $0x19c] ss:$20 sps:$4 sm:$0xff]  }
  0x3d   :  { %1691 = vmatprep.subr.bf16.mxu1 %v3885_v1  ;;  %v3965_v0 = vld [vmem:[%s5491_s1 + $0x690] ss:$20 sps:$4 sm:$0xff]   ;;  %v3980_v1 = vld [vmem:[%s5491_s1 + $0x198] ss:$20 sps:$4 sm:$0xff]  }
  0x3f   :  { %1651 = vmatpush2.bf16.msra.mxu0 %v3887_v2  ;;  %v3973_v2 = vld [vmem:[%s5491_s1 + $0x66c] ss:$20 sps:$4 sm:$0xff]  }
  0x40   :  { %1692 = vmatpush2.bf16.msra.mxu1 %v3888_v3  ;;  %1702 = vmatprep.subr.bf16.mxu0 %v3895_v4  ;;  %v3989_v3 = vld [vmem:[%s5491_s1 + $0x174] ss:$20 sps:$4 sm:$0xff]   ;;  %v310_v4 = vld [vmem:[%s5491_s1 + $0x780] sm:$0x11] }
  0x41   :  { %1784 = vmatprep.subr.bf16.mxu1 %v3904_v5  ;;  %v3971_v5 = vld [vmem:[%s5491_s1 + $0x668] ss:$20 sps:$4 sm:$0xff]  }
  0x42   :  { %1653 = vmatmul.mubr.bf16.vlgmr.msra.gmra.mxu0 %v4527_v6 }
  0x43   :  { %1694 = vmatmul.mubr.bf16.vlgmr.msra.gmra.mxu1 %v4529_v7  ;;  %1703 = vmatpush1.bf16.msra.mxu0 %v3893_v8  ;;  %v3987_v8 = vld [vmem:[%s5491_s1 + $0x170] ss:$20 sps:$4 sm:$0xff]  }
  0x44   :  { %1785 = vmatpush1.bf16.msra.mxu1 %v3902_v9  ;;  %1704 = vmatprep.subr.bf16.mxu0 %v3898_v10  ;;  %v3979_v9 = vld [vmem:[%s5491_s1 + $0x644] ss:$20 sps:$4 sm:$0xff]   ;;  %v3508_v10 = vcombine.high %v310_v4, %v310_v4 }
  0x45   :  { %1786 = vmatprep.subr.bf16.mxu1 %v3910_v11  ;;  %1816 = vmatprep.mubr.bf16.mxu1 %v4458_v47  ;;  %v3992_v11 = vld [vmem:[%s5491_s1 + $0x14c] ss:$20 sps:$4 sm:$0xff]  }
  0x46   :  { %1734 = vmatprep.mubr.bf16.mxu0 %v4610_v32 }
  0x47   :  { %1705 = vmatpush1.bf16.msra.mxu0 %v3896_v12  ;;  %v4289_v12 = vmov 0  }
  0x48   :  { %1787 = vmatpush1.bf16.msra.mxu1 %v3908_v13  ;;  %1706 = vmatprep.subr.bf16.mxu0 %v3901_v14  ;;  %v4728_v13 = vsel %vm1602_vm0, 65535, %v4289_v12  ;;  %v3977_v14 = vld [vmem:[%s5491_s1 + $0x640] ss:$20 sps:$4 sm:$0xff]  }
  0x49   :  { %1788 = vmatprep.subr.bf16.mxu1 %v3916_v15  ;;  %v3507_v15 = vcombine.low %v310_v4, %v310_v4  ;;  %v4063_v4 = vld [vmem:[%s5491_s1 + $0x6e8] ss:$20 sps:$4 sm:$0xff]  }
  0x4b   :  { %1707 = vmatpush1.bf16.msra.mxu0 %v3899_v16  ;;  %v3990_v16 = vld [vmem:[%s5491_s1 + $0x148] ss:$20 sps:$4 sm:$0xff]  }
  0x4c   :  { %1789 = vmatpush1.bf16.msra.mxu1 %v3914_v17  ;;  %1708 = vmatprep.subr.bf16.mxu0 %v3907_v18  ;;  %v1609_v17 = vand.u32 %v3508_v10, %v4728_v13  ;;  %v3999_v18 = vld [vmem:[%s5491_s1 + $0x624] ss:$20 sps:$4 sm:$0xff]   ;;  %v4069_v10 = vld [vmem:[%s5491_s1 + $0x6c0] ss:$20 sps:$4 sm:$0xff]  }
  0x4d   :  { %1790 = vmatprep.subr.bf16.mxu1 %v3922_v19  ;;  %v4742_v19 = vcombine.low %v4603_v30, %v4603_v30  ;;  %v4017_v30 = vld [vmem:[%s5491_s1 + $0x5ac] ss:$20 sps:$4 sm:$0xff]  }
  0x4f   :  { %1709 = vmatpush1.bf16.msra.mxu0 %v3905_v20  ;;  %v1606_v20 = vand.u32 %v3507_v15, %v4728_v13  ;;  %v4068_v15 = vld [vmem:[%s5491_s1 + $0x444] ss:$20 sps:$4 sm:$0xff]  }
  0x50   :  { %1791 = vmatpush1.bf16.msra.mxu1 %v3920_v21  ;;  %1710 = vmatprep.subr.bf16.mxu0 %v3913_v22  ;;  %v3995_v21 = vld [vmem:[%s5491_s1 + $0x3a4] ss:$20 sps:$4 sm:$0xff]   ;;  %v3997_v22 = vld [vmem:[%s5491_s1 + $0x620] ss:$20 sps:$4 sm:$0xff]  }
  0x51   :  { %1792 = vmatprep.subr.bf16.mxu1 %v3928_v23  ;;  %v4005_v23 = vld [vmem:[%s5491_s1 + $0x5fc] ss:$20 sps:$4 sm:$0xff]  }
  0x53   :  { %1711 = vmatpush1.bf16.msra.mxu0 %v3911_v24  ;;  %v4003_v24 = vld [vmem:[%s5491_s1 + $0x5f8] ss:$20 sps:$4 sm:$0xff]  }
  0x54   :  { %1793 = vmatpush1.bf16.msra.mxu1 %v3926_v25  ;;  %1712 = vmatprep.subr.bf16.mxu0 %v3919_v26  ;;  %v3993_v25 = vld [vmem:[%s5491_s1 + $0x3a0] ss:$20 sps:$4 sm:$0xff]  }
  0x55   :  { %1794 = vmatprep.subr.bf16.mxu1 %v3934_v27  ;;  %v4011_v26 = vld [vmem:[%s5491_s1 + $0x5d4] ss:$20 sps:$4 sm:$0xff]   ;;  %v4770_v27 = vld [vmem:[%s5492_s0 + $0x18] ss:$0 sps:$4 sm:$0xff]  }
  0x57   :  { %1713 = vmatpush1.bf16.msra.mxu0 %v3917_v28  ;;  %v4002_v28 = vld [vmem:[%s5491_s1 + $0x37c] ss:$20 sps:$4 sm:$0xff]  }
  0x58   :  { %1795 = vmatpush1.bf16.msra.mxu1 %v3932_v31  ;;  %1714 = vmatprep.subr.bf16.mxu0 %v3925_v29  ;;  %v4009_v29 = vld [vmem:[%s5491_s1 + $0x5d0] ss:$20 sps:$4 sm:$0xff]   ;;  %v4000_v31 = vld [vmem:[%s5491_s1 + $0x378] ss:$20 sps:$4 sm:$0xff]  }
  0x59   :  { %1796 = vmatprep.subr.bf16.mxu1 %v3940_v33  ;;  %v4008_v33 = vld [vmem:[%s5491_s1 + $0x354] ss:$20 sps:$4 sm:$0xff]  }
  0x5b   :  { %1715 = vmatpush1.bf16.msra.mxu0 %v3923_v34  ;;  %v4015_v34 = vld [vmem:[%s5491_s1 + $0x5a8] ss:$20 sps:$4 sm:$0xff]  }
  0x5c   :  { %1797 = vmatpush1.bf16.msra.mxu1 %v3938_v35  ;;  %1716 = vmatprep.subr.bf16.mxu0 %v3931_v36  ;;  %v4023_v35 = vld [vmem:[%s5491_s1 + $0x584] ss:$20 sps:$4 sm:$0xff]  }
  0x5d   :  { %1798 = vmatprep.subr.bf16.mxu1 %v3946_v37  ;;  %v4006_v36 = vld [vmem:[%s5491_s1 + $0x350] ss:$20 sps:$4 sm:$0xff]   ;;  %v4014_v37 = vld [vmem:[%s5491_s1 + $0x32c] ss:$20 sps:$4 sm:$0xff]  }
  0x5f   :  { %1717 = vmatpush1.bf16.msra.mxu0 %v3929_v38  ;;  %v4021_v38 = vld [vmem:[%s5491_s1 + $0x580] ss:$20 sps:$4 sm:$0xff]  }
  0x60   :  { %1799 = vmatpush1.bf16.msra.mxu1 %v3944_v39  ;;  %1718 = vmatprep.subr.bf16.mxu0 %v3937_v40  ;;  %v4029_v39 = vld [vmem:[%s5491_s1 + $0x55c] ss:$20 sps:$4 sm:$0xff]  }
  0x61   :  { %1800 = vmatprep.subr.bf16.mxu1 %v3952_v41  ;;  %v4012_v40 = vld [vmem:[%s5491_s1 + $0x328] ss:$20 sps:$4 sm:$0xff]   ;;  %v4020_v41 = vld [vmem:[%s5491_s1 + $0x304] ss:$20 sps:$4 sm:$0xff]  }
  0x63   :  { %1719 = vmatpush2.bf16.msra.mxu0 %v3935_v42  ;;  %v4027_v42 = vld [vmem:[%s5491_s1 + $0x558] ss:$20 sps:$4 sm:$0xff]  }
  0x64   :  { %1801 = vmatpush2.bf16.msra.mxu1 %v3950_v43  ;;  %1720 = vmatprep.subr.bf16.mxu0 %v3943_v44  ;;  %v4035_v43 = vld [vmem:[%s5491_s1 + $0x534] ss:$20 sps:$4 sm:$0xff]  }
  0x65   :  { %1802 = vmatprep.subr.bf16.mxu1 %v3958_v45  ;;  %v4018_v44 = vld [vmem:[%s5491_s1 + $0x300] ss:$20 sps:$4 sm:$0xff]   ;;  %v4026_v45 = vld [vmem:[%s5491_s1 + $0x2dc] ss:$20 sps:$4 sm:$0xff]  }
  0x67   :  { %1721 = vmatpush2.bf16.msra.mxu0 %v3941_v46  ;;  %v4033_v46 = vld [vmem:[%s5491_s1 + $0x530] ss:$20 sps:$4 sm:$0xff]  }
  0x68   :  { %1803 = vmatpush2.bf16.msra.mxu1 %v3956_v48  ;;  %1722 = vmatprep.subr.bf16.mxu0 %v3949_v49  ;;  %v4041_v48 = vld [vmem:[%s5491_s1 + $0x50c] ss:$20 sps:$4 sm:$0xff]  }
  0x69   :  { %1804 = vmatprep.subr.bf16.mxu1 %v3964_v50  ;;  %v4024_v49 = vld [vmem:[%s5491_s1 + $0x2d8] ss:$20 sps:$4 sm:$0xff]   ;;  %v4032_v50 = vld [vmem:[%s5491_s1 + $0x2b4] ss:$20 sps:$4 sm:$0xff]  }
  0x6b   :  { %1723 = vmatpush2.bf16.msra.mxu0 %v3947_v52  ;;  %v4039_v52 = vld [vmem:[%s5491_s1 + $0x508] ss:$20 sps:$4 sm:$0xff]  }
  0x6c   :  { %1805 = vmatpush2.bf16.msra.mxu1 %v3962_v53  ;;  %1724 = vmatprep.subr.bf16.mxu0 %v3955_v54  ;;  %v4047_v53 = vld [vmem:[%s5491_s1 + $0x764] ss:$20 sps:$4 sm:$0xff]  }
  0x6d   :  { %1806 = vmatprep.subr.bf16.mxu1 %v3970_v55  ;;  %v4030_v54 = vld [vmem:[%s5491_s1 + $0x2b0] ss:$20 sps:$4 sm:$0xff]   ;;  %v4038_v55 = vld [vmem:[%s5491_s1 + $0x28c] ss:$20 sps:$4 sm:$0xff]  }
  0x6f   :  { %1725 = vmatpush2.bf16.msra.mxu0 %v3953_v56  ;;  %v4045_v56 = vld [vmem:[%s5491_s1 + $0x760] ss:$20 sps:$4 sm:$0xff]  }
  0x70   :  { %1807 = vmatpush2.bf16.msra.mxu1 %v3968_v57  ;;  %1726 = vmatprep.subr.bf16.mxu0 %v3961_v58  ;;  %v4053_v57 = vld [vmem:[%s5491_s1 + $0x73c] ss:$20 sps:$4 sm:$0xff]  }
  0x71   :  { %1808 = vmatprep.subr.bf16.mxu1 %v3976_v59  ;;  %v4036_v58 = vld [vmem:[%s5491_s1 + $0x288] ss:$20 sps:$4 sm:$0xff]   ;;  %v4044_v59 = vld [vmem:[%s5491_s1 + $0x4e4] ss:$20 sps:$4 sm:$0xff]  }
  0x73   :  { %1727 = vmatpush2.bf16.msra.mxu0 %v3959_v60  ;;  %v4051_v60 = vld [vmem:[%s5491_s1 + $0x738] ss:$20 sps:$4 sm:$0xff]  }
  0x74   :  { %1809 = vmatpush2.bf16.msra.mxu1 %v3974_v61  ;;  %1728 = vmatprep.subr.bf16.mxu0 %v3967_v62  ;;  %v4059_v61 = vld [vmem:[%s5491_s1 + $0x714] ss:$20 sps:$4 sm:$0xff]  }
  0x75   :  { %1810 = vmatprep.subr.bf16.mxu1 %v3982_v63  ;;  %v4042_v62 = vld [vmem:[%s5491_s1 + $0x4e0] ss:$20 sps:$4 sm:$0xff]   ;;  %v4050_v63 = vld [vmem:[%s5491_s1 + $0x4bc] ss:$20 sps:$4 sm:$0xff]  }
  0x77   :  { %1729 = vmatpush2.bf16.msra.mxu0 %v3965_v0  ;;  %v4057_v0 = vld [vmem:[%s5491_s1 + $0x710] ss:$20 sps:$4 sm:$0xff]  }
  0x78   :  { %1811 = vmatpush2.bf16.msra.mxu1 %v3980_v1  ;;  %1730 = vmatprep.subr.bf16.mxu0 %v3973_v2  ;;  %v4065_v1 = vld [vmem:[%s5491_s1 + $0x6ec] ss:$20 sps:$4 sm:$0xff]  }
  0x79   :  { %1812 = vmatprep.subr.bf16.mxu1 %v3989_v3  ;;  %v4048_v2 = vld [vmem:[%s5491_s1 + $0x4b8] ss:$20 sps:$4 sm:$0xff]   ;;  %v4056_v3 = vld [vmem:[%s5491_s1 + $0x494] ss:$20 sps:$4 sm:$0xff]  }
  0x7b   :  { %1731 = vmatpush2.bf16.msra.mxu0 %v3971_v5  ;;  %v4071_v5 = vld [vmem:[%s5491_s1 + $0x6c4] ss:$20 sps:$4 sm:$0xff]  }
  0x7c   :  { %1813 = vmatpush2.bf16.msra.mxu1 %v3987_v8  ;;  %1732 = vmatprep.subr.bf16.mxu0 %v3979_v9  ;;  %v4054_v8 = vld [vmem:[%s5491_s1 + $0x490] ss:$20 sps:$4 sm:$0xff]   ;;  %v4062_v9 = vld [vmem:[%s5491_s1 + $0x46c] ss:$20 sps:$4 sm:$0xff]  }
  0x7d   :  { %1814 = vmatprep.subr.bf16.mxu1 %v3992_v11  ;;  %v4077_v11 = vld [vmem:[%s5491_s1 + $0x69c] ss:$20 sps:$4 sm:$0xff]  }
  0x7f   :  { %1733 = vmatpush2.bf16.msra.mxu0 %v3977_v14  ;;  %v4060_v14 = vld [vmem:[%s5491_s1 + $0x468] ss:$20 sps:$4 sm:$0xff]  }
  0x80   :  { %1815 = vmatpush2.bf16.msra.mxu1 %v3990_v16  ;;  %1757 = vmatprep.subr.bf16.mxu0 %v1609_v17  ;;  %v4075_v16 = vld [vmem:[%s5491_s1 + $0x698] ss:$20 sps:$4 sm:$0xff]   ;;  %v4083_v17 = vld [vmem:[%s5491_s1 + $0x674] ss:$20 sps:$4 sm:$0xff]  }
  0x81   :  { %1866 = vmatprep.subr.bf16.mxu1 %v3999_v18  ;;  %v4066_v18 = vld [vmem:[%s5491_s1 + $0x440] ss:$20 sps:$4 sm:$0xff]  }
  0x82   :  { %1735 = vmatmul.mubr.bf16.vlgmr.msra.gmra.mxu0 %v4742_v19 }
  0x83   :  { %1817 = vmatmul.mubr.bf16.vlgmr.msra.gmra.mxu1 %v4527_v6  ;;  %1758 = vmatpush1.bf16.msra.mxu0 %v1606_v20  ;;  %v4074_v20 = vld [vmem:[%s5491_s1 + $0x41c] ss:$20 sps:$4 sm:$0xff]  }
  0x84   :  { %1775 = vmatprep.mubr.bf16.mxu0 %v4289_v12  ;;  %1825 = vmatprep.subr.bf16.mxu0 %v3995_v21  ;;  %v4081_v21 = vld [vmem:[%s5491_s1 + $0x670] ss:$20 sps:$4 sm:$0xff]  }
  0x85   :  { %1867 = vmatpush1.bf16.msra.mxu1 %v3997_v22  ;;  %1898 = vmatprep.mubr.bf16.mxu1 %v4610_v32  ;;  %v4089_v22 = vld [vmem:[%s5491_s1 + $0x64c] ss:$20 sps:$4 sm:$0xff]  }
  0x86   :  { %1868 = vmatprep.subr.bf16.mxu1 %v4005_v23  ;;  %v4072_v23 = vld [vmem:[%s5491_s1 + $0x418] ss:$20 sps:$4 sm:$0xff]  }
  0x89   :  { %1869 = vmatpush1.bf16.msra.mxu1 %v4003_v24  ;;  %v4080_v24 = vld [vmem:[%s5491_s1 + $0x3f4] ss:$20 sps:$4 sm:$0xff]  }
  0x8a   :  { %1870 = vmatprep.subr.bf16.mxu1 %v4011_v26  ;;  %3512 = vmatmul.mubr.msk.bf16.vlgmr.msra.gmra.mxu0 %vm1598_vm1, %v4770_v27  ;;  %v311_v26 = vld [vmem:[%s5491_s1 + $0x788] sm:$0x11] }
  0x8b   :  { %1826 = vmatpush1.bf16.msra.mxu0 %v3993_v25  ;;  %1857 = vmatprep.mubr.bf16.mxu0 %v4469_v51  ;;  %v4087_v25 = vld [vmem:[%s5491_s1 + $0x648] ss:$20 sps:$4 sm:$0xff]  }
  0x8c   :  { %1827 = vmatprep.subr.bf16.mxu0 %v4002_v28  ;;  %v4093_v28 = vld [vmem:[%s5491_s1 + $0x4e8] ss:$20 sps:$4 sm:$0xff]  }
  0x8d   :  { %1871 = vmatpush1.bf16.msra.mxu1 %v4009_v29  ;;  %v4078_v29 = vld [vmem:[%s5491_s1 + $0x3f0] ss:$20 sps:$4 sm:$0xff]  }
  0x8e   :  { %1872 = vmatprep.subr.bf16.mxu1 %v4017_v30  ;;  %v4086_v30 = vld [vmem:[%s5491_s1 + $0x3cc] ss:$20 sps:$4 sm:$0xff]  }
  0x8f   :  { %1828 = vmatpush1.bf16.msra.mxu0 %v4000_v31  ;;  %v3510_v31 = vcombine.high %v311_v26, %v311_v26 }
  0x90   :  { %1829 = vmatprep.subr.bf16.mxu0 %v4008_v33  ;;  %v4095_v33 = vld [vmem:[%s5491_s1 + $0x3a8] ss:$20 sps:$4 sm:$0xff]  }
  0x91   :  { %1873 = vmatpush1.bf16.msra.mxu1 %v4015_v34  ;;  %v4097_v34 = vld [vmem:[%s5491_s1 + $0x4c0] ss:$20 sps:$4 sm:$0xff]  }
  0x92   :  { %1874 = vmatprep.subr.bf16.mxu1 %v4023_v35  ;;  %v4084_v35 = vld [vmem:[%s5491_s1 + $0x3c8] ss:$20 sps:$4 sm:$0xff]  }
  0x93   :  { %1830 = vmatpush1.bf16.msra.mxu0 %v4006_v36  ;;  %v4099_v36 = vld [vmem:[%s5491_s1 + $0x380] ss:$20 sps:$4 sm:$0xff]  }
  0x94   :  { %1831 = vmatprep.subr.bf16.mxu0 %v4014_v37  ;;  %v3509_v37 = vcombine.low %v311_v26, %v311_v26  ;;  %v4131_v26 = vld [vmem:[%s5491_s1 + $0x5b0] ss:$20 sps:$4 sm:$0xff]  }
  0x95   :  { %1875 = vmatpush1.bf16.msra.mxu1 %v4021_v38  ;;  %v4101_v38 = vld [vmem:[%s5491_s1 + $0x498] ss:$20 sps:$4 sm:$0xff]  }
  0x96   :  { %1876 = vmatprep.subr.bf16.mxu1 %v4029_v39  ;;  %v1615_v39 = vand.u32 %v3510_v31, %v4728_v13  ;;  %v4133_v31 = vld [vmem:[%s5491_s1 + $0x588] ss:$20 sps:$4 sm:$0xff]  }
  0x97   :  { %1832 = vmatpush1.bf16.msra.mxu0 %v4012_v40  ;;  %v4092_v40 = vld [vmem:[%s5491_s1 + $0x268] ss:$20 sps:$4 sm:$0xff]  }
  0x98   :  { %1833 = vmatprep.subr.bf16.mxu0 %v4020_v41  ;;  %v4103_v41 = vld [vmem:[%s5491_s1 + $0x358] ss:$20 sps:$4 sm:$0xff]  }
  0x99   :  { %1877 = vmatpush1.bf16.msra.mxu1 %v4027_v42  ;;  %v1612_v42 = vand.u32 %v3509_v37, %v4728_v13 }
  0x9a   :  { %1878 = vmatprep.subr.bf16.mxu1 %v4035_v43  ;;  %v4105_v43 = vld [vmem:[%s5491_s1 + $0x470] ss:$20 sps:$4 sm:$0xff]  }
  0x9b   :  { %1834 = vmatpush1.bf16.msra.mxu0 %v4018_v44  ;;  %v4109_v44 = vld [vmem:[%s5491_s1 + $0x448] ss:$20 sps:$4 sm:$0xff]  }
  0x9c   :  { %1835 = vmatprep.subr.bf16.mxu0 %v4026_v45  ;;  %v4094_v45 = vld [vmem:[%s5491_s1 + $0x128] ss:$20 sps:$4 sm:$0xff]  }
  0x9d   :  { %1879 = vmatpush1.bf16.msra.mxu1 %v4033_v46  ;;  %v4096_v46 = vld [vmem:[%s5491_s1 + $0x240] ss:$20 sps:$4 sm:$0xff]  }
  0x9e   :  { %1880 = vmatprep.subr.bf16.mxu1 %v4041_v48  ;;  %v4111_v48 = vld [vmem:[%s5491_s1 + $0x308] ss:$20 sps:$4 sm:$0xff]  }
  0x9f   :  { %1836 = vmatpush1.bf16.msra.mxu0 %v4024_v49  ;;  %v4113_v49 = vld [vmem:[%s5491_s1 + $0x420] ss:$20 sps:$4 sm:$0xff]  }
  0xa0   :  { %1837 = vmatprep.subr.bf16.mxu0 %v4032_v50  ;;  %v4098_v50 = vld [vmem:[%s5491_s1 + $0x100] ss:$20 sps:$4 sm:$0xff]  }
  0xa1   :  { %1881 = vmatpush1.bf16.msra.mxu1 %v4039_v52  ;;  %v4100_v52 = vld [vmem:[%s5491_s1 + $0x218] ss:$20 sps:$4 sm:$0xff]  }
  0xa2   :  { %1882 = vmatprep.subr.bf16.mxu1 %v4047_v53  ;;  %v4115_v53 = vld [vmem:[%s5491_s1 + $0x2e0] ss:$20 sps:$4 sm:$0xff]  }
  0xa3   :  { %1838 = vmatpush1.bf16.msra.mxu0 %v4030_v54  ;;  %v4117_v54 = vld [vmem:[%s5491_s1 + $0x3f8] ss:$20 sps:$4 sm:$0xff]  }
  0xa4   :  { %1839 = vmatprep.subr.bf16.mxu0 %v4038_v55  ;;  %v4102_v55 = vld [vmem:[%s5491_s1 + $0xd8] ss:$20 sps:$4 sm:$0xff]  }
  0xa5   :  { %1883 = vmatpush2.bf16.msra.mxu1 %v4045_v56  ;;  %v4104_v56 = vld [vmem:[%s5491_s1 + $0x1f0] ss:$20 sps:$4 sm:$0xff]  }
  0xa6   :  { %1884 = vmatprep.subr.bf16.mxu1 %v4053_v57  ;;  %v4119_v57 = vld [vmem:[%s5491_s1 + $0x2b8] ss:$20 sps:$4 sm:$0xff]  }
  0xa7   :  { %1840 = vmatpush1.bf16.msra.mxu0 %v4036_v58  ;;  %v4106_v58 = vld [vmem:[%s5491_s1 + $0xb0] ss:$20 sps:$4 sm:$0xff]  }
  0xa8   :  { %1841 = vmatprep.subr.bf16.mxu0 %v4044_v59  ;;  %v4108_v59 = vld [vmem:[%s5491_s1 + $0x1c8] ss:$20 sps:$4 sm:$0xff]  }
  0xa9   :  { %1885 = vmatpush2.bf16.msra.mxu1 %v4051_v60  ;;  %v4123_v60 = vld [vmem:[%s5491_s1 + $0x290] ss:$20 sps:$4 sm:$0xff]  }
  0xaa   :  { %1886 = vmatprep.subr.bf16.mxu1 %v4059_v61  ;;  %v4140_v61 = vld [vmem:[%s5491_s1 + $0x790] ss:$0 sps:$4 sm:$0x11]  }
  0xab   :  { %1842 = vmatpush2.bf16.msra.mxu0 %v4042_v62  ;;  %v4110_v62 = vld [vmem:[%s5491_s1 + $0x88] ss:$20 sps:$4 sm:$0xff]  }
  0xac   :  { %1843 = vmatprep.subr.bf16.mxu0 %v4050_v63  ;;  %v4112_v63 = vld [vmem:[%s5491_s1 + $0x1a0] ss:$20 sps:$4 sm:$0xff]  }
  0xad   :  { %1887 = vmatpush2.bf16.msra.mxu1 %v4057_v0  ;;  %v4143_v0 = vld [vmem:[%s5493_s2 + $0xac] ss:$12 sps:$4 sm:$0xff]  }
  0xae   :  { %1888 = vmatprep.subr.bf16.mxu1 %v4065_v1  ;;  %v1618_v1 = vand.u32 %v4140_v61, %v4728_v13  ;;  %v4176_v61 = vld [vmem:[%s5493_s2 + $0x124] ss:$12 sps:$4 sm:$0xff]  }
  0xaf   :  { %1844 = vmatpush2.bf16.msra.mxu0 %v4048_v2  ;;  %v4114_v2 = vld [vmem:[%s5491_s1 + $0x60] ss:$20 sps:$4 sm:$0xff]  }
  0xb0   :  { %1845 = vmatprep.subr.bf16.mxu0 %v4056_v3  ;;  %v4290_v3 = vmov 0.0  }
  0xb1   :  { %1889 = vmatpush2.bf16.msra.mxu1 %v4063_v4  ;;  %v4116_v4 = vld [vmem:[%s5491_s1 + $0x178] ss:$20 sps:$4 sm:$0xff]  }
  0xb2   :  { %1890 = vmatprep.subr.bf16.mxu1 %v4071_v5  ;;  %v4118_v5 = vld [vmem:[%s5491_s1 + $0x38] ss:$20 sps:$4 sm:$0xff]  }
  0xb3   :  { %1846 = vmatpush2.bf16.msra.mxu0 %v4054_v8  ;;  %v4120_v8 = vld [vmem:[%s5491_s1 + $0x150] ss:$20 sps:$4 sm:$0xff]  }
  0xb4   :  { %1847 = vmatprep.subr.bf16.mxu0 %v4062_v9  ;;  %v4141_v9 = vld [vmem:[%s5493_s2 + $0xa8] ss:$12 sps:$4 sm:$0xff]  }
  0xb5   :  { %1891 = vmatpush2.bf16.msra.mxu1 %v4069_v10  ;;  %v4122_v10 = vld [vmem:[%s5491_s1 + $0x10] ss:$20 sps:$4 sm:$0xff]  }
  0xb6   :  { %1892 = vmatprep.subr.bf16.mxu1 %v4077_v11  ;;  %v4124_v11 = vld [vmem:[%s5491_s1 + $0x768] ss:$20 sps:$4 sm:$0xff]  }
  0xb7   :  { %1848 = vmatpush2.bf16.msra.mxu0 %v4060_v14  ;;  %v4144_v14 = vld [vmem:[%s5493_s2 + $0x90] ss:$12 sps:$4 sm:$0xff]  }
  0xb8   :  { %1849 = vmatprep.subr.bf16.mxu0 %v4068_v15  ;;  %v4149_v15 = vld [vmem:[%s5493_s2 + $0x7c] ss:$12 sps:$4 sm:$0xff]  }
  0xb9   :  { %1893 = vmatpush2.bf16.msra.mxu1 %v4075_v16  ;;  %v4125_v16 = vld [vmem:[%s5491_s1 + $0x628] ss:$20 sps:$4 sm:$0xff]  }
  0xba   :  { %1894 = vmatprep.subr.bf16.mxu1 %v4083_v17  ;;  %v4126_v17 = vld [vmem:[%s5491_s1 + $0x740] ss:$20 sps:$4 sm:$0xff]  }
  0xbb   :  { %1850 = vmatpush2.bf16.msra.mxu0 %v4066_v18  ;;  %v4152_v18 = vld [vmem:[%s5493_s2 + $0x64] ss:$12 sps:$4 sm:$0xff]  }
  0xbc   :  { %1851 = vmatprep.subr.bf16.mxu0 %v4074_v20  ;;  %v4127_v20 = vld [vmem:[%s5491_s1 + $0x600] ss:$20 sps:$4 sm:$0xff]  }
  0xbd   :  { %1895 = vmatpush2.bf16.msra.mxu1 %v4081_v21  ;;  %v4128_v21 = vld [vmem:[%s5491_s1 + $0x718] ss:$20 sps:$4 sm:$0xff]  }
  0xbe   :  { %1896 = vmatprep.subr.bf16.mxu1 %v4089_v22  ;;  %v4150_v22 = vld [vmem:[%s5493_s2 + $0x60] ss:$12 sps:$4 sm:$0xff]  }
  0xbf   :  { %1852 = vmatpush2.bf16.msra.mxu0 %v4072_v23  ;;  %v4130_v23 = vld [vmem:[%s5491_s1 + $0x6f0] ss:$20 sps:$4 sm:$0xff]  }
  0xc0   :  { %1853 = vmatprep.subr.bf16.mxu0 %v4080_v24  ;;  %v4153_v24 = vld [vmem:[%s5493_s2 + $0x48] ss:$12 sps:$4 sm:$0xff]  }
  0xc1   :  { %1897 = vmatpush2.bf16.msra.mxu1 %v4087_v25  ;;  %v4158_v25 = vld [vmem:[%s5493_s2 + $0x34] ss:$12 sps:$4 sm:$0xff]  }
  0xc2   :  { %3656 = vmatprep.subr.bf16.mxu1 %v4093_v28  ;;  %v4132_v28 = vld [vmem:[%s5491_s1 + $0x6c8] ss:$20 sps:$4 sm:$0xff]  }
  0xc3   :  { %1854 = vmatpush2.bf16.msra.mxu0 %v4078_v29  ;;  %v4156_v29 = vld [vmem:[%s5493_s2 + $0x30] ss:$12 sps:$4 sm:$0xff]  }
  0xc4   :  { %1899 = vmatmul.mubr.bf16.vlgmr.msra.gmra.mxu1 %v4742_v19  ;;  %1855 = vmatprep.subr.bf16.mxu0 %v4086_v30  ;;  %v4161_v30 = vld [vmem:[%s5493_s2 + $0x1c] ss:$12 sps:$4 sm:$0xff]  }
  0xc5   :  { %3657 = vmatpush3.bf16.msra.mxu1 %v4095_v33  ;;  %2020 = vmatprep.mubr.bf16.mxu1 %v4469_v51  ;;  %v4107_v51 = vld [vmem:[%s5491_s1 + $0x330] ss:$20 sps:$4 sm:$0xff]   ;;  %v4134_v33 = vld [vmem:[%s5491_s1 + $0x6a0] ss:$20 sps:$4 sm:$0xff]  }
  0xc6   :  { %3658 = vmatprep.subr.bf16.mxu1 %v4097_v34  ;;  %v4159_v34 = vld [vmem:[%s5493_s2 + $0x18] ss:$12 sps:$4 sm:$0xff]  }
  0xc7   :  { %1856 = vmatpush2.bf16.msra.mxu0 %v4084_v35  ;;  %v4164_v35 = vld [vmem:[%s5493_s2 + $0x4] ss:$12 sps:$4 sm:$0xff]  }
  0xc8   :  { %1921 = vmatprep.subr.bf16.mxu0 %v1615_v39  ;;  %v4135_v39 = vld [vmem:[%s5491_s1 + $0x560] ss:$20 sps:$4 sm:$0xff]  }
  0xc9   :  { %3659 = vmatpush3.bf16.msra.mxu1 %v4099_v36 }
  0xca   :  { %3660 = vmatprep.subr.bf16.mxu1 %v4101_v38  ;;  %1858 = vmatmul.mubr.bf16.vlgmr.msra.gmra.mxu0 %v4529_v7 }
  0xcb   :  { %1922 = vmatpush1.bf16.msra.mxu0 %v1612_v42  ;;  %1939 = vmatprep.mubr.bf16.mxu0 %v4289_v12  ;;  %v4136_v42 = vld [vmem:[%s5491_s1 + $0x678] ss:$20 sps:$4 sm:$0xff]  }
  0xcc   :  { %3634 = vmatprep.subr.bf16.mxu0 %v4092_v40 }
  0xcd   :  { %3661 = vmatpush3.bf16.msra.mxu1 %v4103_v41 }
  0xce   :  { %3662 = vmatprep.subr.bf16.mxu1 %v4105_v43  ;;  %v4162_v43 = vld [vmem:[%s5493_s2] ss:$12 sps:$4 sm:$0xff]  }
  0xd1   :  { %3663 = vmatpush3.bf16.msra.mxu1 %v4107_v51 }
  0xd2   :  { %3664 = vmatprep.subr.bf16.mxu1 %v4109_v44  ;;  %3513 = vmatmul.mubr.msk.bf16.vlgmr.msra.gmra.mxu0 %vm1598_vm1, %v4770_v27  ;;  %v4167_v44 = vld [vmem:[%s5493_s2 + $0x16c] ss:$12 sps:$4 sm:$0xff]  }
  0xd3   :  { %3635 = vmatpush3.bf16.msra.mxu0 %v4094_v45  ;;  %1980 = vmatprep.mubr.bf16.mxu0 %v4458_v47  ;;  %v4121_v47 = vld [vmem:[%s5491_s1 + $0x3d0] ss:$20 sps:$4 sm:$0xff]  }
  0xd4   :  { %3636 = vmatprep.subr.bf16.mxu0 %v4096_v46 }
  0xd5   :  { %3665 = vmatpush3.bf16.msra.mxu1 %v4111_v48  ;;  %v4137_v48 = vld [vmem:[%s5491_s1 + $0x538] ss:$20 sps:$4 sm:$0xff]  }
  0xd6   :  { %3666 = vmatprep.subr.bf16.mxu1 %v4113_v49 }
  0xd7   :  { %3637 = vmatpush3.bf16.msra.mxu0 %v4098_v50  ;;  %v4138_v50 = vld [vmem:[%s5491_s1 + $0x650] ss:$20 sps:$4 sm:$0xff]  }
  0xd8   :  { %3638 = vmatprep.subr.bf16.mxu0 %v4100_v52 }
  0xd9   :  { %3667 = vmatpush3.bf16.msra.mxu1 %v4115_v53  ;;  %v4165_v53 = vld [vmem:[%s5493_s2 + $0x168] ss:$12 sps:$4 sm:$0xff]  }
  0xda   :  { %3668 = vmatprep.subr.bf16.mxu1 %v4117_v54  ;;  %v4170_v54 = vld [vmem:[%s5493_s2 + $0x154] ss:$12 sps:$4 sm:$0xff]  }
  0xdb   :  { %3639 = vmatpush3.bf16.msra.mxu0 %v4102_v55  ;;  %v4139_v55 = vld [vmem:[%s5491_s1 + $0x510] ss:$20 sps:$4 sm:$0xff]  }
  0xdc   :  { %3640 = vmatprep.subr.bf16.mxu0 %v4104_v56  ;;  %v4168_v56 = vld [vmem:[%s5493_s2 + $0x150] ss:$12 sps:$4 sm:$0xff]  }
  0xdd   :  { %3669 = vmatpush3.bf16.msra.mxu1 %v4119_v57  ;;  %v4191_v57 = vld [vmem:[%s5493_s2 + $0x22c] ss:$12 sps:$4 sm:$0xff]  }
  0xde   :  { %3670 = vmatprep.subr.bf16.mxu1 %v4121_v47  ;;  %v4173_v47 = vld [vmem:[%s5493_s2 + $0x13c] ss:$12 sps:$4 sm:$0xff]  }
  0xdf   :  { %3641 = vmatpush3.bf16.msra.mxu0 %v4106_v58  ;;  %v4189_v58 = vld [vmem:[%s5493_s2 + $0x228] ss:$12 sps:$4 sm:$0xff]  }
  0xe0   :  { %3642 = vmatprep.subr.bf16.mxu0 %v4108_v59  ;;  %v4171_v59 = vld [vmem:[%s5493_s2 + $0x138] ss:$12 sps:$4 sm:$0xff]  }
  0xe1   :  { %3671 = vmatpush3.bf16.msra.mxu1 %v4123_v60  ;;  %v4194_v60 = vld [vmem:[%s5493_s2 + $0x214] ss:$12 sps:$4 sm:$0xff]  }
  0xe2   :  { %3772 = vmatprep.subr.bf16.mxu1 %v4290_v3 }
  0xe3   :  { %3643 = vmatpush3.bf16.msra.mxu0 %v4110_v62  ;;  %v4192_v62 = vld [vmem:[%s5493_s2 + $0x210] ss:$12 sps:$4 sm:$0xff]  }
  0xe4   :  { %2021 = vmatmul.mubr.bf16.vlgmr.msra.gmra.mxu1 %v4529_v7  ;;  %3644 = vmatprep.subr.bf16.mxu0 %v4112_v63  ;;  %v4146_v7 = vld [vmem:[%s5493_s2 + $0x94] ss:$12 sps:$4 sm:$0xff]  }
  0xe5   :  { %3773 = vmatpush3.bf16.msra.mxu1 %v1618_v1  ;;  %3774 = vmatprep.mubr.msk.bf16.mxu1 %vm4291_vm2, %v4290_v3  ;;  %v4174_v63 = vld [vmem:[%s5493_s2 + $0x120] ss:$12 sps:$4 sm:$0xff]   ;;  %v4195_v1 = vld [vmem:[%s5493_s2 + $0x1f8] ss:$12 sps:$4 sm:$0xff]  }
  0xe6   :  { %2785 = vmatprep.subr.bf16.mxu1 %v4143_v0  ;;  %v4197_v0 = vld [vmem:[%s5493_s2 + $0x1fc] ss:$12 sps:$4 sm:$0xff]  }
  0xe7   :  { %3645 = vmatpush3.bf16.msra.mxu0 %v4114_v2  ;;  %v4177_v2 = vld [vmem:[%s5493_s2 + $0x108] ss:$12 sps:$4 sm:$0xff]  }
  0xe8   :  { %3646 = vmatprep.subr.bf16.mxu0 %v4116_v4  ;;  %v4200_v4 = vld [vmem:[%s5493_s2 + $0x1e4] ss:$12 sps:$4 sm:$0xff]  }
  0xeb   :  { %3647 = vmatpush3.bf16.msra.mxu0 %v4118_v5  ;;  %v4182_v5 = vld [vmem:[%s5493_s2 + $0xf4] ss:$12 sps:$4 sm:$0xff]  }
  0xec   :  { %3775 = vmatmul.mubr.msk.bf16.vlgmr.msra.gmra.mxu1 %vm1598_vm1, %v4770_v27  ;;  %3648 = vmatprep.subr.bf16.mxu0 %v4120_v8  ;;  %v4147_v27 = vld [vmem:[%s5493_s2 + $0x78] ss:$12 sps:$4 sm:$0xff]   ;;  %v4198_v8 = vld [vmem:[%s5493_s2 + $0x1e0] ss:$12 sps:$4 sm:$0xff]  }
  0xed   :  { %2786 = vmatpush1.bf16.msra.mxu1 %v4141_v9  ;;  %v4180_v9 = vld [vmem:[%s5493_s2 + $0xf0] ss:$12 sps:$4 sm:$0xff]  }
  0xee   :  { %2787 = vmatprep.subr.bf16.mxu1 %v4146_v7  ;;  %v4203_v7 = vld [vmem:[%s5493_s2 + $0x1cc] ss:$12 sps:$4 sm:$0xff]  }
  0xef   :  { %3649 = vmatpush3.bf16.msra.mxu0 %v4122_v10  ;;  %v4185_v10 = vld [vmem:[%s5493_s2 + $0xdc] ss:$12 sps:$4 sm:$0xff]  }
  0xf0   :  { %3678 = vmatprep.subr.bf16.mxu0 %v4124_v11  ;;  %v4201_v11 = vld [vmem:[%s5493_s2 + $0x1c8] ss:$12 sps:$4 sm:$0xff]  }
  0xf1   :  { %2788 = vmatpush1.bf16.msra.mxu1 %v4144_v14  ;;  %v4183_v14 = vld [vmem:[%s5493_s2 + $0xd8] ss:$12 sps:$4 sm:$0xff]  }
  0xf2   :  { %2789 = vmatprep.subr.bf16.mxu1 %v4149_v15  ;;  %1981 = vmatmul.mubr.bf16.vlgmr.msra.gmra.mxu0 %v4527_v6  ;;  %v4155_v6 = vld [vmem:[%s5493_s2 + $0x4c] ss:$12 sps:$4 sm:$0xff]   ;;  %v4206_v15 = vld [vmem:[%s5493_s2 + $0x1b4] ss:$12 sps:$4 sm:$0xff]  }
  0xf3   :  { %3679 = vmatpush3.bf16.msra.mxu0 %v4125_v16  ;;  %2060 = vmatprep.mubr.bf16.mxu0 %v4610_v32  ;;  %v4129_v32 = vld [vmem:[%s5491_s1 + $0x5d8] ss:$20 sps:$4 sm:$0xff]   ;;  %v4188_v16 = vld [vmem:[%s5493_s2 + $0xc4] ss:$12 sps:$4 sm:$0xff]  }
  0xf4   :  { %3680 = vmatprep.subr.bf16.mxu0 %v4126_v17  ;;  %v4204_v17 = vld [vmem:[%s5493_s2 + $0x1b0] ss:$12 sps:$4 sm:$0xff]  }
  0xf5   :  { %2790 = vmatpush1.bf16.msra.mxu1 %v4147_v27  ;;  %v4186_v27 = vld [vmem:[%s5493_s2 + $0xc0] ss:$12 sps:$4 sm:$0xff]  }
  0xf6   :  { %2791 = vmatprep.subr.bf16.mxu1 %v4152_v18  ;;  %v4209_v18 = vld [vmem:[%s5493_s2 + $0x19c] ss:$12 sps:$4 sm:$0xff]  }
  0xf7   :  { %3681 = vmatpush3.bf16.msra.mxu0 %v4127_v20  ;;  %v4207_v20 = vld [vmem:[%s5493_s2 + $0x198] ss:$12 sps:$4 sm:$0xff]  }
  0xf8   :  { %3682 = vmatprep.subr.bf16.mxu0 %v4128_v21  ;;  %v4212_v21 = vld [vmem:[%s5493_s2 + $0x184] ss:$12 sps:$4 sm:$0xff]  }
  0xf9   :  { %2792 = vmatpush1.bf16.msra.mxu1 %v4150_v22  ;;  %v4210_v22 = vld [vmem:[%s5493_s2 + $0x180] ss:$12 sps:$4 sm:$0xff]  }
  0xfa   :  { %2793 = vmatprep.subr.bf16.mxu1 %v4155_v6  ;;  %v4215_v6 = vld [vmem:[%s5493_s2 + $0x2ec] ss:$12 sps:$4 sm:$0xff]  }
  0xfb   :  { %3683 = vmatpush3.bf16.msra.mxu0 %v4129_v32  ;;  %v4213_v32 = vld [vmem:[%s5493_s2 + $0x2e8] ss:$12 sps:$4 sm:$0xff]  }
  0xfc   :  { %3684 = vmatprep.subr.bf16.mxu0 %v4130_v23  ;;  %v4218_v23 = vld [vmem:[%s5493_s2 + $0x2d4] ss:$12 sps:$4 sm:$0xff]  }
  0xfd   :  { %2794 = vmatpush1.bf16.msra.mxu1 %v4153_v24  ;;  %v4216_v24 = vld [vmem:[%s5493_s2 + $0x2d0] ss:$12 sps:$4 sm:$0xff]  }
  0xfe   :  { %2795 = vmatprep.subr.bf16.mxu1 %v4158_v25  ;;  %v4221_v25 = vld [vmem:[%s5493_s2 + $0x2bc] ss:$12 sps:$4 sm:$0xff]  }
  0xff   :  { %3685 = vmatpush3.bf16.msra.mxu0 %v4131_v26  ;;  %v4219_v26 = vld [vmem:[%s5493_s2 + $0x2b8] ss:$12 sps:$4 sm:$0xff]  }
 0x100   :  { %3686 = vmatprep.subr.bf16.mxu0 %v4132_v28  ;;  %v4224_v28 = vld [vmem:[%s5493_s2 + $0x2a4] ss:$12 sps:$4 sm:$0xff]  }
 0x101   :  { %2796 = vmatpush1.bf16.msra.mxu1 %v4156_v29  ;;  %v4222_v29 = vld [vmem:[%s5493_s2 + $0x2a0] ss:$12 sps:$4 sm:$0xff]  }
 0x102   :  { %2797 = vmatprep.subr.bf16.mxu1 %v4161_v30  ;;  %v1654_v36 = vpop.f32.mrf.mxu0  ;;  %v4227_v30 = vld [vmem:[%s5493_s2 + $0x28c] ss:$12 sps:$4 sm:$0xff]  }
 0x103   :  { %v1695_v37 = vpop.f32.mrf.mxu1  ;;  %3687 = vmatpush3.bf16.msra.mxu0 %v4133_v31  ;;  %v4225_v31 = vld [vmem:[%s5493_s2 + $0x288] ss:$12 sps:$4 sm:$0xff]  }
 0x104   :  { %v5144_v38 = vadd.f32 %v1695_v37, %v1654_v36  ;;  %v1656_v40 = vpop.f32.mrf.mxu0  ;;  %3688 = vmatprep.subr.bf16.mxu0 %v4134_v33  ;;  %v4230_v33 = vld [vmem:[%s5493_s2 + $0x274] ss:$12 sps:$4 sm:$0xff]   ;;  %v4228_v36 = vld [vmem:[%s5493_s2 + $0x270] ss:$12 sps:$4 sm:$0xff]  }
 0x105   :  { %v1697_v41 = vpop.f32.mrf.mxu1  ;;  %2798 = vmatpush1.bf16.msra.mxu1 %v4159_v34 }
 0x106   :  { %v5155_v51 = vadd.f32 %v1697_v41, %v1656_v40  ;;  %2799 = vmatprep.subr.bf16.mxu1 %v4164_v35  ;;  %v1658_v45 = vpop.f32.mrf.mxu0  ;;  %v4233_v40 = vld [vmem:[%s5493_s2 + $0x25c] ss:$12 sps:$4 sm:$0xff]  }
 0x107   :  { %v1699_v46 = vpop.f32.mrf.mxu1  ;;  %3689 = vmatpush3.bf16.msra.mxu0 %v4135_v39 }
 0x108   :  { %v1659_v49 = vpop.f32.mrf.mxu0  ;;  %3690 = vmatprep.subr.bf16.mxu0 %v4136_v42  ;;  %v4236_v46 = vld [vmem:[%s5493_s2 + $0x244] ss:$12 sps:$4 sm:$0xff]  }
 0x109   :  { %v1700_v52 = vpop.f32.mrf.mxu1  ;;  %2800 = vmatpush1.bf16.msra.mxu1 %v4162_v43  ;;  %v4231_v43 = vld [vmem:[%s5493_s2 + $0x258] ss:$12 sps:$4 sm:$0xff]  }
 0x10a   :  { %2801 = vmatprep.subr.bf16.mxu1 %v4167_v44 }
 0x10b   :  { %3691 = vmatpush3.bf16.msra.mxu0 %v4137_v48 }
 0x10c   :  { %3692 = vmatprep.subr.bf16.mxu0 %v4138_v50 }
 0x10d   :  { %2802 = vmatpush2.bf16.msra.mxu1 %v4165_v53  ;;  %v4234_v53 = vld [vmem:[%s5493_s2 + $0x240] ss:$12 sps:$4 sm:$0xff]  }
 0x10e   :  { %2803 = vmatprep.subr.bf16.mxu1 %v4170_v54 }
 0x10f   :  { %3693 = vmatpush3.bf16.msra.mxu0 %v4139_v55  ;;  %v4237_v55 = vld [vmem:[%s5493_s2 + $0x2f0] ss:$12 sps:$4 sm:$0xff]  }
 0x110   :  { %2826 = vmatprep.subr.bf16.mxu0 %v4191_v57 }
 0x111   :  { %2804 = vmatpush2.bf16.msra.mxu1 %v4168_v56 }
 0x112   :  { %2805 = vmatprep.subr.bf16.mxu1 %v4173_v47  ;;  %2061 = vmatmul.mubr.bf16.vlgmr.msra.gmra.mxu0 %v4742_v19  ;;  %v4179_v19 = vld [vmem:[%s5493_s2 + $0x10c] ss:$12 sps:$4 sm:$0xff]  }
 0x113   :  { %2827 = vmatpush1.bf16.msra.mxu0 %v4189_v58 }
 0x114   :  { %2828 = vmatprep.subr.bf16.mxu0 %v4194_v60 }
 0x115   :  { %2806 = vmatpush2.bf16.msra.mxu1 %v4171_v59 }
 0x116   :  { %2807 = vmatprep.subr.bf16.mxu1 %v4176_v61 }
 0x117   :  { %2829 = vmatpush1.bf16.msra.mxu0 %v4192_v62  ;;  %v2251_v62 = vld [vmem:[%s5493_s2 + $0x300] sm:$0x11] }
 0x118   :  { %2830 = vmatprep.subr.bf16.mxu0 %v4197_v0  ;;  %v3611_v0 = vcombine.low %v2251_v62, %v2251_v62 }
 0x119   :  { %2808 = vmatpush2.bf16.msra.mxu1 %v4174_v63  ;;  %v3612_v63 = vcombine.high %v2251_v62, %v2251_v62 }
 0x11a   :  { %2809 = vmatprep.subr.bf16.mxu1 %v4179_v19 }
 0x11b   :  { %2831 = vmatpush1.bf16.msra.mxu0 %v4195_v1  ;;  %v2780_v19 = vand.u32 %v3612_v63, %v4728_v13  ;;  %v2777_v1 = vand.u32 %v3611_v0, %v4728_v13 }
 0x11c   :  { %2832 = vmatprep.subr.bf16.mxu0 %v4200_v4 }
 0x11d   :  { %2810 = vmatpush2.bf16.msra.mxu1 %v4177_v2  ;;  %v4255_v2 = vld [vmem:[%s5493_s2 + $0x170] ss:$12 sps:$4 sm:$0xff]  }
 0x11e   :  { %2811 = vmatprep.subr.bf16.mxu1 %v4182_v5 }
 0x11f   :  { %2833 = vmatpush1.bf16.msra.mxu0 %v4198_v8 }
 0x120   :  { %2834 = vmatprep.subr.bf16.mxu0 %v4203_v7 }
 0x121   :  { %2812 = vmatpush2.bf16.msra.mxu1 %v4180_v9 }
 0x122   :  { %2813 = vmatprep.subr.bf16.mxu1 %v4185_v10 }
 0x123   :  { %2835 = vmatpush1.bf16.msra.mxu0 %v4201_v11 }
 0x124   :  { %2836 = vmatprep.subr.bf16.mxu0 %v4206_v15 }
 0x125   :  { %2814 = vmatpush2.bf16.msra.mxu1 %v4183_v14 }
 0x126   :  { %2815 = vmatprep.subr.bf16.mxu1 %v4188_v16 }
 0x127   :  { %2837 = vmatpush1.bf16.msra.mxu0 %v4204_v17 }
 0x128   :  { %2838 = vmatprep.subr.bf16.mxu0 %v4209_v18 }
 0x129   :  { %2816 = vmatpush2.bf16.msra.mxu1 %v4186_v27 }
 0x12a   :  { %2881 = vmatprep.subr.bf16.mxu1 %v2780_v19 }
 0x12b   :  { %2839 = vmatpush1.bf16.msra.mxu0 %v4207_v20 }
 0x12c   :  { %2840 = vmatprep.subr.bf16.mxu0 %v4212_v21 }
 0x12f   :  { %2841 = vmatpush1.bf16.msra.mxu0 %v4210_v22 }
 0x130   :  { %2842 = vmatprep.subr.bf16.mxu0 %v4215_v6 }
 0x133   :  { %2843 = vmatpush2.bf16.msra.mxu0 %v4213_v32 }
 0x134   :  { %2844 = vmatprep.subr.bf16.mxu0 %v4218_v23 }
 0x137   :  { %2845 = vmatpush2.bf16.msra.mxu0 %v4216_v24 }
 0x138   :  { %2846 = vmatprep.subr.bf16.mxu0 %v4221_v25 }
 0x13b   :  { %2847 = vmatpush2.bf16.msra.mxu0 %v4219_v26 }
 0x13c   :  { %2848 = vmatprep.subr.bf16.mxu0 %v4224_v28  ;;  %v4238_v28 = vld [vmem:[%s5493_s2 + $0x230] ss:$12 sps:$4 sm:$0xff]  }
 0x13f   :  { %2849 = vmatpush2.bf16.msra.mxu0 %v4222_v29 }
 0x140   :  { %2850 = vmatprep.subr.bf16.mxu0 %v4227_v30  ;;  %v4239_v30 = vld [vmem:[%s5493_s2 + $0x2d8] ss:$12 sps:$4 sm:$0xff]  }
 0x142   :  { %v1736_v34 = vpop.f32.mrf.mxu0 }
 0x143   :  { %v1818_v35 = vpop.f32.mrf.mxu1  ;;  %2851 = vmatpush2.bf16.msra.mxu0 %v4225_v31  ;;  %v1737_v48 = vadd.f32 %v1736_v34, %v5144_v38  ;;  %v4240_v31 = vld [vmem:[%s5493_s2 + $0x218] ss:$12 sps:$4 sm:$0xff]   ;;  %v4242_v34 = vld [vmem:[%s5493_s2 + $0x200] ss:$12 sps:$4 sm:$0xff]  }
 0x144   :  { %v1738_v37 = vpop.f32.mrf.mxu0  ;;  %2852 = vmatprep.subr.bf16.mxu0 %v4230_v33  ;;  %v4241_v33 = vld [vmem:[%s5493_s2 + $0x2c0] ss:$12 sps:$4 sm:$0xff]  }
 0x145   :  { %v1820_v39 = vpop.f32.mrf.mxu1  ;;  %v1739_v50 = vadd.f32 %v1738_v37, %v5155_v51 }
 0x146   :  { %v1740_v41 = vpop.f32.mrf.mxu0 }
 0x147   :  { %v1822_v42 = vpop.f32.mrf.mxu1  ;;  %2853 = vmatpush2.bf16.msra.mxu0 %v4228_v36  ;;  %v4243_v36 = vld [vmem:[%s5493_s2 + $0x2a8] ss:$12 sps:$4 sm:$0xff]   ;;  %v4245_v41 = vld [vmem:[%s5493_s2 + $0x290] ss:$12 sps:$4 sm:$0xff]  }
 0x148   :  { %v1741_v44 = vpop.f32.mrf.mxu0  ;;  %2854 = vmatprep.subr.bf16.mxu0 %v4233_v40 }
 0x149   :  { %v1823_v45 = vpop.f32.mrf.mxu1 }
 0x14a   :  { %v1777_v49 = vpop.f32.mrf.mxu0  ;;  %v4247_v45 = vld [vmem:[%s5493_s2 + $0x278] ss:$12 sps:$4 sm:$0xff]  }
 0x14b   :  { %v1778_v52 = vadd.f32 %v1777_v49, %v1737_v48  ;;  %2855 = vmatpush2.bf16.msra.mxu0 %v4231_v43  ;;  %v4246_v43 = vld [vmem:[%s5493_s2 + $0x1d0] ss:$12 sps:$4 sm:$0xff]   ;;  %v4248_v48 = vld [vmem:[%s5493_s2 + $0x1b8] ss:$12 sps:$4 sm:$0xff]  }
 0x14c   :  { %v1779_v54 = vpop.f32.mrf.mxu0  ;;  %2856 = vmatprep.subr.bf16.mxu0 %v4236_v46 }
 0x14d   :  { %v2108_v56 = vmul.f32 0.01, %v1778_v52  ;;  %v1780_v57 = vadd.f32 %v1779_v54, %v1739_v50  ;;  %v4249_v50 = vld [vmem:[%s5493_s2 + $0x260] ss:$12 sps:$4 sm:$0xff]  }
 0x14e   :  { %v1781_v47 = vpop.f32.mrf.mxu0  ;;  %v4250_v54 = vld [vmem:[%s5493_s2 + $0x1a0] ss:$12 sps:$4 sm:$0xff]  }
 0x14f   :  { %v2109_v58 = vmul.f32 0.01, %v1780_v57  ;;  %2857 = vmatpush2.bf16.msra.mxu0 %v4234_v53  ;;  %v2113_v38 = vmax.f32 %v1778_v52, %v2108_v56  ;;  %v4251_v56 = vld [vmem:[%s5493_s2 + $0x248] ss:$12 sps:$4 sm:$0xff]  }
 0x150   :  { %v1782_v59 = vpop.f32.mrf.mxu0  ;;  %3724 = vmatprep.subr.bf16.mxu0 %v4237_v55  ;;  %v4252_v47 = vld [vmem:[%s5493_s2 + $0x188] ss:$12 sps:$4 sm:$0xff]  }
 0x151   :  { %v2114_v51 = vmax.f32 %v1780_v57, %v2109_v58  ;;  %v5318_v61 = vpack.c.bf16 %v2113_v38, %v2113_v38 }
 0x153   :  { %v5316_v60 = vpack.c.bf16 %v2114_v51, %v2114_v51 }
 0x155   :  { %2817 = vmatprep.mubr.bf16.mxu1 %v5316_v60 }
 0x156   :  { %2818 = vmatmul.mubr.bf16.vlgmr.msra.gmra.mxu1 %v5318_v61 }
 0x157   :  { %2899 = vmatprep.mubr.bf16.mxu1 %v4289_v12  ;;  %2882 = vmatpush1.bf16.msra.mxu1 %v2777_v1 }
 0x158   :  { %3702 = vmatprep.subr.bf16.mxu1 %v4255_v2 }
 0x184   :  { %v1900_v4 = vpop.f32.mrf.mxu1 }
 0x186   :  { %v1902_v5 = vpop.f32.mrf.mxu1 }
 0x188   :  { %v1904_v8 = vpop.f32.mrf.mxu1 }
 0x18a   :  { %v1905_v9 = vpop.f32.mrf.mxu1  ;;  %v1859_v7 = vpop.f32.mrf.mxu0 }
 0x18b   :  { %v1860_v12 = vadd.f32 %v1859_v7, %v1818_v35  ;;  %v4256_v9 = vld [vmem:[%s5493_s2 + $0xb0] ss:$12 sps:$4 sm:$0xff]  }
 0x18c   :  { %v1861_v10 = vpop.f32.mrf.mxu0 }
 0x18d   :  { %v1862_v14 = vadd.f32 %v1861_v10, %v1820_v39  ;;  %v1901_v16 = vadd.f32 %v1900_v4, %v1860_v12  ;;  %v4244_v39 = vld [vmem:[%s5493_s2 + $0x1e8] ss:$12 sps:$4 sm:$0xff]   ;;  %v4257_v10 = vld [vmem:[%s5493_s2 + $0x158] ss:$12 sps:$4 sm:$0xff]  }
 0x18e   :  { %v1863_v11 = vpop.f32.mrf.mxu0  ;;  %v4258_v12 = vld [vmem:[%s5493_s2 + $0x98] ss:$12 sps:$4 sm:$0xff]  }
 0x18f   :  { %v1903_v27 = vadd.f32 %v1902_v5, %v1862_v14  ;;  %v4259_v11 = vld [vmem:[%s5493_s2 + $0x140] ss:$12 sps:$4 sm:$0xff]  }
 0x190   :  { %v1864_v15 = vpop.f32.mrf.mxu0  ;;  %v4260_v14 = vld [vmem:[%s5493_s2 + $0x80] ss:$12 sps:$4 sm:$0xff]  }
 0x191   :  { %v4261_v15 = vld [vmem:[%s5493_s2 + $0x128] ss:$12 sps:$4 sm:$0xff]  }
 0x192   :  { %v1941_v17 = vpop.f32.mrf.mxu0 }
 0x193   :  { %v1942_v18 = vadd.f32 %v1941_v17, %v1901_v16  ;;  %v4263_v16 = vld [vmem:[%s5493_s2 + $0x110] ss:$12 sps:$4 sm:$0xff]  }
 0x194   :  { %v1943_v20 = vpop.f32.mrf.mxu0  ;;  %v4264_v17 = vld [vmem:[%s5493_s2 + $0x50] ss:$12 sps:$4 sm:$0xff]  }
 0x195   :  { %v2110_v21 = vmul.f32 0.01, %v1942_v18  ;;  %v1944_v22 = vadd.f32 %v1943_v20, %v1903_v27  ;;  %v4265_v27 = vld [vmem:[%s5493_s2 + $0xf8] ss:$12 sps:$4 sm:$0xff]   ;;  %v4267_v20 = vld [vmem:[%s5493_s2 + $0xe0] ss:$12 sps:$4 sm:$0xff]  }
 0x196   :  { %v1945_v6 = vpop.f32.mrf.mxu0 }
 0x197   :  { %v2111_v32 = vmul.f32 0.01, %v1944_v22  ;;  %v2115_v23 = vmax.f32 %v1942_v18, %v2110_v21  ;;  %v4266_v18 = vld [vmem:[%s5493_s2 + $0x38] ss:$12 sps:$4 sm:$0xff]   ;;  %v4268_v21 = vld [vmem:[%s5493_s2 + $0x20] ss:$12 sps:$4 sm:$0xff]  }
 0x198   :  { %v1946_v24 = vpop.f32.mrf.mxu0  ;;  %v4270_v6 = vld [vmem:[%s5493_s2 + $0x8] ss:$12 sps:$4 sm:$0xff]  }
 0x199   :  { %v2116_v25 = vmax.f32 %v1944_v22, %v2111_v32  ;;  %v2120_v29 = vpack.c.bf16 %v2115_v23, %v2115_v23  ;;  %v4269_v22 = vld [vmem:[%s5493_s2 + $0xc8] ss:$12 sps:$4 sm:$0xff]   ;;  %v4272_v24 = vld [vmem:[%s5494_s3 + $0x78] sm:$0xff]  }
 0x19a   :  { %v4271_v32 = vld [vmem:[%s5493_s2 + $0x308] ss:$0 sps:$4 sm:$0x11]  }
 0x19b   :  { %v2121_v26 = vpack.c.bf16 %v2116_v25, %v2116_v25  ;;  %v2783_v23 = vand.u32 %v4271_v32, %v4728_v13  ;;  %v4273_v25 = vld [vmem:[%s5494_s3 + $0x38] sm:$0xff]  }
 0x19d   :  { %2858 = vmatprep.mubr.bf16.mxu0 %v2121_v26 }
 0x19e   :  { %2859 = vmatmul.mubr.bf16.vlgmr.msra.gmra.mxu0 %v2120_v29 }
 0x19f   :  { %3725 = vmatpush3.bf16.msra.mxu0 %v4238_v28  ;;  %2980 = vmatprep.mubr.bf16.mxu0 %v2121_v26  ;;  %v4274_v26 = vld [vmem:[%s5494_s3 + $0x70] sm:$0xff]   ;;  %v4277_v28 = vld [vmem:[%s5494_s3 + $0x28] sm:$0xff]  }
 0x1a0   :  { %3726 = vmatprep.subr.bf16.mxu0 %v4239_v30  ;;  %v4279_v30 = vld [vmem:[%s5494_s3 + $0x20] sm:$0xff]  }
 0x1a3   :  { %3727 = vmatpush3.bf16.msra.mxu0 %v4240_v31  ;;  %v4280_v31 = vld [vmem:[%s5494_s3 + $0x58] sm:$0xff]  }
 0x1a4   :  { %v3672_v35 = vpop.f32.mrf.mxu1  ;;  %3728 = vmatprep.subr.bf16.mxu0 %v4241_v33 }
 0x1a6   :  { %v3673_v37 = vpop.f32.mrf.mxu1 }
 0x1a7   :  { %3729 = vmatpush3.bf16.msra.mxu0 %v4242_v34  ;;  %v3674_v59 = vadd.f32 %v3673_v37, %v3672_v35  ;;  %v4281_v34 = vld [vmem:[%s5494_s3 + $0x18] sm:$0xff]  }
 0x1a8   :  { %v3675_v40 = vpop.f32.mrf.mxu1  ;;  %3730 = vmatprep.subr.bf16.mxu0 %v4243_v36 }
 0x1a9   :  { %v4283_v40 = vld [vmem:[%s5494_s3 + $0x10] sm:$0xff]  }
 0x1aa   :  { %v3676_v42 = vpop.f32.mrf.mxu1 }
 0x1ab   :  { %3731 = vmatpush3.bf16.msra.mxu0 %v4244_v39  ;;  %v4282_v39 = vld [vmem:[%s5494_s3 + $0x50] sm:$0xff]   ;;  %v4285_v42 = vld [vmem:[%s5494_s3 + $0x8] sm:$0xff]  }
 0x1ac   :  { %v2102_v44 = vpop.f32.mrf.mxu1  ;;  %3732 = vmatprep.subr.bf16.mxu0 %v4245_v41  ;;  %v4284_v41 = vld [vmem:[%s5494_s3 + $0x48] sm:$0xff]  }
 0x1ae   :  { %v3776_v46 = vpop.f32.mrf.mxu1 }
 0x1af   :  { %3733 = vmatpush3.bf16.msra.mxu0 %v4246_v43  ;;  %v4286_v43 = vld [vmem:[%s5494_s3 + $0x40] sm:$0xff]  }
 0x1b0   :  { %v2105_v49 = vpop.f32.mrf.mxu1  ;;  %3734 = vmatprep.subr.bf16.mxu0 %v4247_v45  ;;  %v4288_v45 = vld [vmem:[%s5494_s3 + $0x80] ss:$0 sps:$4 sm:$0x11]  }
 0x1b1   :  { %v3173_v46 = vand.u32 %v4288_v45, %v4728_v13 }
 0x1b2   :  { %v3777_v52 = vpop.f32.mrf.mxu1  ;;  %v3650_v53 = vpop.f32.mrf.mxu0 }
 0x1b3   :  { %3735 = vmatpush3.bf16.msra.mxu0 %v4248_v48 }
 0x1b4   :  { %v3651_v55 = vpop.f32.mrf.mxu0  ;;  %3736 = vmatprep.subr.bf16.mxu0 %v4249_v50 }
 0x1b5   :  { %v3652_v38 = vadd.f32 %v3651_v55, %v3650_v53 }
 0x1b6   :  { %v3653_v57 = vpop.f32.mrf.mxu0 }
 0x1b7   :  { %3737 = vmatpush3.bf16.msra.mxu0 %v4250_v54  ;;  %v2023_v63 = vadd.f32 %v3674_v59, %v3652_v38 }
 0x1b8   :  { %v3654_v58 = vpop.f32.mrf.mxu0  ;;  %3738 = vmatprep.subr.bf16.mxu0 %v4251_v56 }
 0x1bb   :  { %3739 = vmatpush3.bf16.msra.mxu0 %v4252_v47 }
 0x1bc   :  { %3784 = vmatprep.subr.bf16.mxu0 %v4290_v3 }
 0x1be   :  { %2981 = vmatmul.mubr.bf16.vlgmr.msra.gmra.mxu0 %v2120_v29  ;;  %v4278_v29 = vld [vmem:[%s5494_s3 + $0x60] sm:$0xff]  }
 0x1bf   :  { %3786 = vmatprep.mubr.msk.bf16.mxu0 %vm4291_vm2, %v4290_v3  ;;  %3785 = vmatpush3.bf16.msra.mxu0 %v3173_v46 }
 0x1d2   :  { %v3694_v51 = vpop.f32.mrf.mxu0 }
 0x1d4   :  { %v3695_v62 = vpop.f32.mrf.mxu0 }
 0x1d5   :  { %v3696_v0 = vadd.f32 %v3695_v62, %v3694_v51 }
 0x1d6   :  { %v3697_v19 = vpop.f32.mrf.mxu0 }
 0x1d7   :  { %v2063_v1 = vadd.f32 %v3696_v0, %v2023_v63 }
 0x1d8   :  { %v3698_v2 = vpop.f32.mrf.mxu0 }
 0x1d9   :  { %v2103_v4 = vadd.f32 %v2102_v44, %v2063_v1  ;;  %v4287_v44 = vld [vmem:[%s5494_s3] sm:$0xff]  }
 0x1db   :  { %v2112_v5 = vmul.f32 0.01, %v2103_v4 }
 0x1dd   :  { %v2117_v8 = vmax.f32 %v2103_v4, %v2112_v5 }
 0x1df   :  { %v2122_v7 = vpack.c.bf16 %v2117_v8, %v2117_v8 }
 0x1e1   :  { %3614 = vmatmul.mubr.msk.bf16.vlgmr.msra.gmra.mxu1 %vm1598_vm1, %v2122_v7 }
 0x1e2   :  { %3703 = vmatpush3.bf16.msra.mxu1 %v4256_v9  ;;  %2940 = vmatprep.mubr.bf16.mxu1 %v5316_v60  ;;  %v4262_v60 = vld [vmem:[%s5493_s2 + $0x68] ss:$12 sps:$4 sm:$0xff]  }
 0x1e3   :  { %3704 = vmatprep.subr.bf16.mxu1 %v4257_v10 }
 0x1e6   :  { %3705 = vmatpush3.bf16.msra.mxu1 %v4258_v12 }
 0x1e7   :  { %3706 = vmatprep.subr.bf16.mxu1 %v4259_v11 }
 0x1ea   :  { %3707 = vmatpush3.bf16.msra.mxu1 %v4260_v14 }
 0x1eb   :  { %3708 = vmatprep.subr.bf16.mxu1 %v4261_v15 }
 0x1ee   :  { %3709 = vmatpush3.bf16.msra.mxu1 %v4262_v60 }
 0x1ef   :  { %3710 = vmatprep.subr.bf16.mxu1 %v4263_v16 }
 0x1f2   :  { %3711 = vmatpush3.bf16.msra.mxu1 %v4264_v17 }
 0x1f3   :  { %3712 = vmatprep.subr.bf16.mxu1 %v4265_v27 }
 0x1f6   :  { %3713 = vmatpush3.bf16.msra.mxu1 %v4266_v18 }
 0x1f7   :  { %3714 = vmatprep.subr.bf16.mxu1 %v4267_v20 }
 0x1fa   :  { %3715 = vmatpush3.bf16.msra.mxu1 %v4268_v21 }
 0x1fb   :  { %3716 = vmatprep.subr.bf16.mxu1 %v4269_v22 }
 0x1fe   :  { %3717 = vmatpush3.bf16.msra.mxu1 %v4270_v6 }
 0x1ff   :  { %3778 = vmatprep.subr.bf16.mxu1 %v4290_v3 }
 0x201   :  { %2941 = vmatmul.mubr.bf16.vlgmr.msra.gmra.mxu1 %v5318_v61  ;;  %v4276_v61 = vld [vmem:[%s5494_s3 + $0x68] sm:$0xff]  }
 0x202   :  { %3779 = vmatpush3.bf16.msra.mxu1 %v2783_v23  ;;  %3780 = vmatprep.mubr.msk.bf16.mxu1 %vm4291_vm2, %v4290_v3  ;;  %v4275_v3 = vld [vmem:[%s5494_s3 + $0x30] sm:$0xff]  }
 0x203   :  { %3748 = vmatprep.subr.bf16.mxu1 %v4272_v24 }
 0x209   :  { %3781 = vmatmul.mubr.msk.bf16.vlgmr.msra.gmra.mxu1 %vm1598_vm1, %v2122_v7 }
 0x20a   :  { %3749 = vmatpush3.bf16.msra.mxu1 %v4273_v25 }
 0x20b   :  { %3750 = vmatprep.subr.bf16.mxu1 %v4274_v26 }
 0x20e   :  { %3751 = vmatpush3.bf16.msra.mxu1 %v4275_v3 }
 0x20f   :  { %3752 = vmatprep.subr.bf16.mxu1 %v4276_v61 }
 0x212   :  { %3753 = vmatpush3.bf16.msra.mxu1 %v4277_v28 }
 0x213   :  { %3754 = vmatprep.subr.bf16.mxu1 %v4278_v29 }
 0x216   :  { %v2819_v33 = vpop.f32.mrf.mxu1  ;;  %3755 = vmatpush3.bf16.msra.mxu1 %v4279_v30 }
 0x217   :  { %3756 = vmatprep.subr.bf16.mxu1 %v4280_v31 }
 0x218   :  { %v2821_v35 = vpop.f32.mrf.mxu1 }
 0x21a   :  { %v2823_v36 = vpop.f32.mrf.mxu1  ;;  %3757 = vmatpush3.bf16.msra.mxu1 %v4281_v34 }
 0x21b   :  { %3758 = vmatprep.subr.bf16.mxu1 %v4282_v39 }
 0x21c   :  { %v2824_v37 = vpop.f32.mrf.mxu1 }
 0x21e   :  { %3759 = vmatpush3.bf16.msra.mxu1 %v4283_v40 }
 0x21f   :  { %3760 = vmatprep.subr.bf16.mxu1 %v4284_v41 }
 0x222   :  { %3761 = vmatpush3.bf16.msra.mxu1 %v4285_v42 }
 0x223   :  { %3762 = vmatprep.subr.bf16.mxu1 %v4286_v43 }
 0x226   :  { %3763 = vmatpush3.bf16.msra.mxu1 %v4287_v44 }
 0x25e   :  { %v2860_v48 = vpop.f32.mrf.mxu0 }
 0x25f   :  { %v2861_v47 = vadd.f32 %v2860_v48, %v2819_v33 }
 0x260   :  { %v2862_v49 = vpop.f32.mrf.mxu0 }
 0x261   :  { %v2863_v38 = vadd.f32 %v2862_v49, %v2821_v35 }
 0x262   :  { %v2864_v50 = vpop.f32.mrf.mxu0 }
 0x264   :  { %v2865_v52 = vpop.f32.mrf.mxu0 }
 0x27e   :  { %v3740_v53 = vpop.f32.mrf.mxu0 }
 0x280   :  { %v3741_v54 = vpop.f32.mrf.mxu0 }
 0x281   :  { %v3742_v55 = vadd.f32 %v3741_v54, %v3740_v53 }
 0x282   :  { %v3743_v56 = vpop.f32.mrf.mxu0 }
 0x284   :  { %v3744_v57 = vpop.f32.mrf.mxu0 }
 0x2a1   :  { %v2901_v58 = vpop.f32.mrf.mxu1 }
 0x2a2   :  { %v2902_v59 = vadd.f32 %v2901_v58, %v2861_v47 }
 0x2a3   :  { %v2903_v51 = vpop.f32.mrf.mxu1 }
 0x2a4   :  { %v3028_v62 = vmul.f32 0.01, %v2902_v59  ;;  %v2904_v63 = vadd.f32 %v2903_v51, %v2863_v38 }
 0x2a5   :  { %v2905_v0 = vpop.f32.mrf.mxu1 }
 0x2a6   :  { %v3029_v19 = vmul.f32 0.01, %v2904_v63  ;;  %v3031_v13 = vmax.f32 %v2902_v59, %v3028_v62 }
 0x2a7   :  { %v2906_v1 = vpop.f32.mrf.mxu1 }
 0x2a8   :  { %v3032_v2 = vmax.f32 %v2904_v63, %v3029_v19  ;;  %v3034_v5 = vpack.c.bf16 %v3031_v13, %v3031_v13 }
 0x2aa   :  { %v3035_v4 = vpack.c.bf16 %v3032_v2, %v3032_v2 }
 0x2ac   :  { %3207 = vmatprep.mubr.bf16.mxu1 %v3035_v4 }
 0x2ad   :  { %3208 = vmatmul.mubr.bf16.vlgmr.msra.gmra.mxu1 %v3034_v5 }
 0x2c1   :  { %v3718_v8 = vpop.f32.mrf.mxu1 }
 0x2c3   :  { %v3719_v9 = vpop.f32.mrf.mxu1 }
 0x2c4   :  { %v3720_v7 = vadd.f32 %v3719_v9, %v3718_v8 }
 0x2c5   :  { %v3721_v10 = vpop.f32.mrf.mxu1 }
 0x2c6   :  { %v2983_v11 = vadd.f32 %v3742_v55, %v3720_v7 }
 0x2c7   :  { %v3722_v12 = vpop.f32.mrf.mxu1 }
 0x2c9   :  { %v3022_v14 = vpop.f32.mrf.mxu1 }
 0x2ca   :  { %v3023_v15 = vadd.f32 %v3022_v14, %v2983_v11 }
 0x2cb   :  { %v3782_v60 = vpop.f32.mrf.mxu1 }
 0x2cc   :  { %v3030_v16 = vmul.f32 0.01, %v3023_v15 }
 0x2cd   :  { %v3025_v17 = vpop.f32.mrf.mxu1 }
 0x2ce   :  { %v3033_v27 = vmax.f32 %v3023_v15, %v3030_v16 }
 0x2cf   :  { %v3783_v18 = vpop.f32.mrf.mxu1 }
 0x2d0   :  { %v3036_v20 = vpack.c.bf16 %v3033_v27, %v3033_v27 }
 0x2d2   :  { %3787 = vmatmul.mubr.msk.bf16.vlgmr.msra.gmra.mxu0 %vm1598_vm1, %v3036_v20 }
 0x36d   :  { %v3764_v21 = vpop.f32.mrf.mxu1 }
 0x36f   :  { %v3765_v22 = vpop.f32.mrf.mxu1 }
 0x370   :  { %v3766_v23 = vadd.f32 %v3765_v22, %v3764_v21 }
 0x371   :  { %v3767_v6 = vpop.f32.mrf.mxu1 }
 0x373   :  { %v3768_v32 = vpop.f32.mrf.mxu1 }
 0x392   :  { %v3249_v24 = vpop.f32.mrf.mxu0 }
 0x393   :  { %v3250_v25 = vadd.f32 %v3766_v23, %v3249_v24 }
 0x394   :  { %v3788_v26 = vpop.f32.mrf.mxu0 }
 0x395   :  { %3255 = vst [vmem:[%s5495_s4] sm:$0xff] %v3250_v25 }
 0x396   :  { %v3252_v3 = vpop.f32.mrf.mxu0 }
 0x398   :  { %v3789_v61 = vpop.f32.mrf.mxu0 }

</bundles_post_ra>
